<compile_context>
chip_gen: v6e
topology: v6e:2x2x1
jax: 0.10.0
libtpu: 0.0.40
codegen_flags: <defaults>
</compile_context>

<pallas_src>
import functools

import jax
import jax.numpy as jnp
from jax.experimental import pallas as pl
from jax.experimental.pallas import tpu as pltpu


def _cnn_rnn_kernel(x_ref, wih_ref, whh_ref, b_ref, wcls_ref, bcls_ref,
                    o_ref, *, batch, seq, hidden):
    B, T, H = batch, seq, hidden

    # Hoisted input projection for all frames in one MXU pass:
    #   bf16 (B*T, D) @ bf16 (D, 4H) -> f32, plus pre-summed (b_ih + b_hh).
    x_bf16 = x_ref[...].astype(jnp.bfloat16)
    xg = (jnp.dot(x_bf16, wih_ref[...], preferred_element_type=jnp.float32)
          + b_ref[...])
    # b-major rows (row = b*T + t): free split of the sublane dim, last dim kept.
    xg = xg.reshape(B, T, 4 * H)

    whh = whh_ref[...]            # (H, 4H) f32, read once, reused every frame

    h = jnp.zeros((B, H), jnp.float32)
    c = jnp.zeros((B, H), jnp.float32)
    hs = []

    # Unrolled recurrence: per frame only the tiny (B,H)@(H,4H) matmul + gates.
    # Packed gate order [f, i, o, g]: the lanes 0..H slice (f) is the one
    # combined with c first; one contiguous 3H sigmoid + one H tanh.
    for t in range(T):
        gates = xg[:, t, :] + jnp.dot(h, whh, preferred_element_type=jnp.float32)
        sig = jax.nn.sigmoid(gates[:, :3 * H])
        f_g = sig[:, 0 * H:1 * H]
        i_g = sig[:, 1 * H:2 * H]
        o_g = sig[:, 2 * H:3 * H]
        g_g = jnp.tanh(gates[:, 3 * H:4 * H])
        c = f_g * c + i_g * g_g
        h = o_g * jnp.tanh(c)
        hs.append(h)                       # stays register-resident (no scratch)

    # b-major hidden-state block (row = b*T + t), built in vregs.
    hs_all = jnp.concatenate(
        [hs[t][b:b + 1, :] for b in range(B) for t in range(T)], axis=0)

    # Lane-dense classifier: (B*T, H) @ (H, 128-padded) + bias, one dense store.
    scores = (jnp.dot(hs_all, wcls_ref[...], preferred_element_type=jnp.float32)
              + bcls_ref[...])
    o_ref[...] = scores.astype(o_ref.dtype)


def cnn_rnn_forward(x, kparams):
    """x: (B, T, D) float32 features. Returns scores (B, T, C)."""
    B, T, D = x.shape
    H = kparams["whh_t"].shape[0]
    Cp = kparams["wcls_t"].shape[1]           # lane-padded class dim (>=128)
    C = kparams["num_classes"]

    x2d = x.reshape(B * T, D)     # free: no transpose/copy of the full input

    kernel = functools.partial(_cnn_rnn_kernel, batch=B, seq=T, hidden=H)

    scores_pad = pl.pallas_call(
        kernel,
        out_shape=jax.ShapeDtypeStruct((B * T, Cp), jnp.float32),
        grid_spec=pltpu.PrefetchScalarGridSpec(
            num_scalar_prefetch=0,
            grid=(1,),
            in_specs=[
                pl.BlockSpec((B * T, D), lambda i: (0, 0)),      # features (f32)
                pl.BlockSpec((D, 4 * H), lambda i: (0, 0)),      # W_ih^T (bf16, packed)
                pl.BlockSpec((H, 4 * H), lambda i: (0, 0)),      # W_hh^T (f32, packed)
                pl.BlockSpec((1, 4 * H), lambda i: (0, 0)),      # b_ih + b_hh
                pl.BlockSpec((H, Cp), lambda i: (0, 0)),         # W_cls^T (lane-padded)
                pl.BlockSpec((1, Cp), lambda i: (0, 0)),         # b_cls (lane-padded)
            ],
            out_specs=pl.BlockSpec((B * T, Cp), lambda i: (0, 0)),
        ),
        compiler_params=pltpu.CompilerParams(
            dimension_semantics=("arbitrary",)),
    )(x2d, kparams["wih_t"], kparams["whh_t"], kparams["b"],
      kparams["wcls_t"], kparams["bcls"])

    # Kernel rows are already b-major: only a cheap lane slice remains.
    return scores_pad.reshape(B, T, Cp)[:, :, :C]


def make_raw_params(key, feat_dim, hidden, num_classes):
    """torch-layout parameters (nn.LSTMCell + nn.Linear init ranges)."""
    ks = jax.random.split(key, 6)
    bound = 1.0 / jnp.sqrt(hidden)
    wih = jax.random.uniform(ks[0], (4 * hidden, feat_dim), jnp.float32, -bound, bound)
    whh = jax.random.uniform(ks[1], (4 * hidden, hidden), jnp.float32, -bound, bound)
    bih = jax.random.uniform(ks[2], (4 * hidden,), jnp.float32, -bound, bound)
    bhh = jax.random.uniform(ks[3], (4 * hidden,), jnp.float32, -bound, bound)
    wcls = jax.random.uniform(ks[4], (num_classes, hidden), jnp.float32, -bound, bound)
    bcls = jax.random.uniform(ks[5], (num_classes,), jnp.float32, -bound, bound)
    return {"wih": wih, "whh": whh, "bih": bih, "bhh": bhh,
            "wcls": wcls, "bcls": bcls}


def pack_params(raw, lane=128):
    """Repack torch-layout params for the kernel.

    * gate rows reordered from torch's [i, f, g, o] to [f, i, o, g] so the
      three sigmoid gates are one contiguous 3H slice and the lanes-0..H gate
      (f) is the first one combined with c,
    * LSTM weights transposed to (D, 4H)/(H, 4H); W_ih stored bf16 (halves the
      dominant HBM DMA), biases pre-summed in f32,
    * classifier transposed and zero-padded to (H, 128)/(1, 128) for a
      lane-dense output store.
    """
    H = raw["whh"].shape[1]
    C = raw["wcls"].shape[0]
    Cp = max(lane, ((C + lane - 1) // lane) * lane)
    perm = jnp.concatenate([jnp.arange(1 * H, 2 * H),     # f
                            jnp.arange(0 * H, 1 * H),     # i
                            jnp.arange(3 * H, 4 * H),     # o
                            jnp.arange(2 * H, 3 * H)])    # g
    wcls_t = jnp.zeros((H, Cp), jnp.float32).at[:, :C].set(raw["wcls"].T)
    bcls = jnp.zeros((1, Cp), jnp.float32).at[:, :C].set(raw["bcls"].reshape(1, -1))
    return {
        "wih_t": raw["wih"][perm].T.astype(jnp.bfloat16),     # (D, 4H) bf16
        "whh_t": raw["whh"][perm].T,                          # (H, 4H) f32
        "b": (raw["bih"] + raw["bhh"])[perm].reshape(1, -1),  # (1, 4H) f32
        "wcls_t": wcls_t,                                     # (H, Cp) f32
        "bcls": bcls,                                         # (1, Cp) f32
        "num_classes": C,
    }


def reference_forward(x, raw):
    """Pure-JAX f32 reference mirroring torch.nn.LSTMCell + Linear (torch gate order)."""
    B, T, D = x.shape
    H = raw["whh"].shape[1]
    h = jnp.zeros((B, H), x.dtype)
    c = jnp.zeros((B, H), x.dtype)
    outs = []
    for t in range(T):
        gates = (x[:, t] @ raw["wih"].T + raw["bih"]
                 + h @ raw["whh"].T + raw["bhh"])
        i_g = jax.nn.sigmoid(gates[:, 0 * H:1 * H])
        f_g = jax.nn.sigmoid(gates[:, 1 * H:2 * H])
        g_g = jnp.tanh(gates[:, 2 * H:3 * H])
        o_g = jax.nn.sigmoid(gates[:, 3 * H:4 * H])
        c = f_g * c + i_g * g_g
        h = o_g * jnp.tanh(c)
        outs.append(h @ raw["wcls"].T + raw["bcls"])
    return jnp.stack(outs, axis=1)


if __name__ == "__main__":
    # args.from_features=True, feature_extractor='mobilenet_v2' -> feat_vect_dim=1280
    # args.rnn_hidden_size=32, args.num_classes=10, dropout inactive (eval)
    B, T, D, H, C = 2, 8, 1280, 32, 10

    key = jax.random.PRNGKey(0)
    kx, kp = jax.random.split(key)
    x = jax.random.normal(kx, (B, T, D), jnp.float32)
    raw = make_raw_params(kp, D, H, C)
    kparams = pack_params(raw)

    scores = jax.block_until_ready(cnn_rnn_forward(x, kparams))
    ref = jax.block_until_ready(reference_forward(x, raw))

    assert scores.shape == (B, T, C), scores.shape
    # bf16 input projection (f32 accumulation): loosened tolerance vs f32 reference.
    assert jnp.allclose(scores, ref, atol=2e-2, rtol=2e-2), "mismatch vs reference"
    print("KERNEL_OK")
</pallas_src>

<mosaic_0001>
module attributes {stable_mosaic.version = 11 : i64} {
  func.func @_cnn_rnn_kernel(%arg0: i32, %arg1: memref<16x1280xf32, #tpu.memory_space<vmem>>, %arg2: memref<1280x128xbf16, #tpu.memory_space<vmem>>, %arg3: memref<32x128xf32, #tpu.memory_space<vmem>>, %arg4: memref<1x128xf32, #tpu.memory_space<vmem>>, %arg5: memref<32x128xf32, #tpu.memory_space<vmem>>, %arg6: memref<1x128xf32, #tpu.memory_space<vmem>>, %arg7: memref<16x128xf32, #tpu.memory_space<vmem>>) attributes {dimension_semantics = [#tpu.dimension_semantics<arbitrary>], iteration_bounds = array<i64: 1>, scalar_prefetch = 0 : i64, scratch_operands = 0 : i64, tpu.core_type = #tpu.core_type<tc>, window_params = [{pipeline_mode = #tpu.pipeline_mode<synchronous>, transform_indices = @transform_0, window_bounds = array<i64: 16, 1280>}, {pipeline_mode = #tpu.pipeline_mode<synchronous>, transform_indices = @transform_1, window_bounds = array<i64: 1280, 128>}, {pipeline_mode = #tpu.pipeline_mode<synchronous>, transform_indices = @transform_2, window_bounds = array<i64: 32, 128>}, {pipeline_mode = #tpu.pipeline_mode<synchronous>, transform_indices = @transform_3, window_bounds = array<i64: 1, 128>}, {pipeline_mode = #tpu.pipeline_mode<synchronous>, transform_indices = @transform_4, window_bounds = array<i64: 32, 128>}, {pipeline_mode = #tpu.pipeline_mode<synchronous>, transform_indices = @transform_5, window_bounds = array<i64: 1, 128>}, {pipeline_mode = #tpu.pipeline_mode<synchronous>, transform_indices = @transform_6, window_bounds = array<i64: 16, 128>}]} {
    %c0 = arith.constant 0 : index
    %c0_0 = arith.constant 0 : index
    %0 = vector.load %arg1[%c0, %c0_0] : memref<16x1280xf32, #tpu.memory_space<vmem>>, vector<16x1280xf32>
    %1 = arith.truncf %0 : vector<16x1280xf32> to vector<16x1280xbf16>
    %c0_1 = arith.constant 0 : index
    %c0_2 = arith.constant 0 : index
    %2 = vector.load %arg2[%c0_1, %c0_2] : memref<1280x128xbf16, #tpu.memory_space<vmem>>, vector<1280x128xbf16>
    %cst = arith.constant dense<0.000000e+00> : vector<16x128xf32>
    %3 = tpu.matmul %1, %2, %cst {dimension_numbers = #tpu.dot_dimension_numbers<[1], [0], [0], [1], [0, 0, 1, 1], [], []>} : vector<16x1280xbf16>, vector<1280x128xbf16>, vector<16x128xf32> -> vector<16x128xf32>
    %c0_3 = arith.constant 0 : index
    %c0_4 = arith.constant 0 : index
    %4 = vector.load %arg4[%c0_3, %c0_4] : memref<1x128xf32, #tpu.memory_space<vmem>>, vector<1x128xf32>
    %5 = vector.broadcast %4 : vector<1x128xf32> to vector<16x128xf32>
    %6 = arith.addf %3, %5 : vector<16x128xf32>
    %7 = vector.shape_cast %6 : vector<16x128xf32> to vector<2x8x128xf32>
    %c0_5 = arith.constant 0 : index
    %c0_6 = arith.constant 0 : index
    %8 = vector.load %arg3[%c0_5, %c0_6] : memref<32x128xf32, #tpu.memory_space<vmem>>, vector<32x128xf32>
    %cst_7 = arith.constant 0.000000e+00 : f32
    %9 = vector.broadcast %cst_7 : f32 to vector<2x32xf32>
    %cst_8 = arith.constant 0.000000e+00 : f32
    %10 = vector.broadcast %cst_8 : f32 to vector<2x32xf32>
    %11 = vector.extract_strided_slice %7 {offsets = [0, 0, 0], sizes = [2, 1, 128], strides = [1, 1, 1]} : vector<2x8x128xf32> to vector<2x1x128xf32>
    %12 = vector.shape_cast %11 : vector<2x1x128xf32> to vector<2x128xf32>
    %cst_9 = arith.constant dense<0.000000e+00> : vector<2x128xf32>
    %13 = tpu.matmul %9, %8, %cst_9 {dimension_numbers = #tpu.dot_dimension_numbers<[1], [0], [0], [1], [0, 0, 1, 1], [], []>} : vector<2x32xf32>, vector<32x128xf32>, vector<2x128xf32> -> vector<2x128xf32>
    %14 = arith.addf %12, %13 : vector<2x128xf32>
    %15 = vector.extract_strided_slice %14 {offsets = [0, 0], sizes = [2, 96], strides = [1, 1]} : vector<2x128xf32> to vector<2x96xf32>
    %16 = arith.negf %15 : vector<2x96xf32>
    %17 = math.exp %16 : vector<2x96xf32>
    %cst_10 = arith.constant 1.000000e+00 : f32
    %18 = vector.broadcast %cst_10 : f32 to vector<2x96xf32>
    %19 = arith.addf %18, %17 : vector<2x96xf32>
    %20 = arith.divf %18, %19 : vector<2x96xf32>
    %21 = vector.extract_strided_slice %20 {offsets = [0, 0], sizes = [2, 32], strides = [1, 1]} : vector<2x96xf32> to vector<2x32xf32>
    %22 = vector.extract_strided_slice %20 {offsets = [0, 32], sizes = [2, 32], strides = [1, 1]} : vector<2x96xf32> to vector<2x32xf32>
    %23 = vector.extract_strided_slice %20 {offsets = [0, 64], sizes = [2, 32], strides = [1, 1]} : vector<2x96xf32> to vector<2x32xf32>
    %24 = vector.extract_strided_slice %14 {offsets = [0, 96], sizes = [2, 32], strides = [1, 1]} : vector<2x128xf32> to vector<2x32xf32>
    %25 = math.tanh %24 : vector<2x32xf32>
    %26 = arith.mulf %21, %10 : vector<2x32xf32>
    %27 = arith.mulf %22, %25 : vector<2x32xf32>
    %28 = arith.addf %26, %27 : vector<2x32xf32>
    %29 = math.tanh %28 : vector<2x32xf32>
    %30 = arith.mulf %23, %29 : vector<2x32xf32>
    %31 = vector.extract_strided_slice %7 {offsets = [0, 1, 0], sizes = [2, 1, 128], strides = [1, 1, 1]} : vector<2x8x128xf32> to vector<2x1x128xf32>
    %32 = vector.shape_cast %31 : vector<2x1x128xf32> to vector<2x128xf32>
    %cst_11 = arith.constant dense<0.000000e+00> : vector<2x128xf32>
    %33 = tpu.matmul %30, %8, %cst_11 {dimension_numbers = #tpu.dot_dimension_numbers<[1], [0], [0], [1], [0, 0, 1, 1], [], []>} : vector<2x32xf32>, vector<32x128xf32>, vector<2x128xf32> -> vector<2x128xf32>
    %34 = arith.addf %32, %33 : vector<2x128xf32>
    %35 = vector.extract_strided_slice %34 {offsets = [0, 0], sizes = [2, 96], strides = [1, 1]} : vector<2x128xf32> to vector<2x96xf32>
    %36 = arith.negf %35 : vector<2x96xf32>
    %37 = math.exp %36 : vector<2x96xf32>
    %cst_12 = arith.constant 1.000000e+00 : f32
    %38 = vector.broadcast %cst_12 : f32 to vector<2x96xf32>
    %39 = arith.addf %38, %37 : vector<2x96xf32>
    %40 = arith.divf %38, %39 : vector<2x96xf32>
    %41 = vector.extract_strided_slice %40 {offsets = [0, 0], sizes = [2, 32], strides = [1, 1]} : vector<2x96xf32> to vector<2x32xf32>
    %42 = vector.extract_strided_slice %40 {offsets = [0, 32], sizes = [2, 32], strides = [1, 1]} : vector<2x96xf32> to vector<2x32xf32>
    %43 = vector.extract_strided_slice %40 {offsets = [0, 64], sizes = [2, 32], strides = [1, 1]} : vector<2x96xf32> to vector<2x32xf32>
    %44 = vector.extract_strided_slice %34 {offsets = [0, 96], sizes = [2, 32], strides = [1, 1]} : vector<2x128xf32> to vector<2x32xf32>
    %45 = math.tanh %44 : vector<2x32xf32>
    %46 = arith.mulf %41, %28 : vector<2x32xf32>
    %47 = arith.mulf %42, %45 : vector<2x32xf32>
    %48 = arith.addf %46, %47 : vector<2x32xf32>
    %49 = math.tanh %48 : vector<2x32xf32>
    %50 = arith.mulf %43, %49 : vector<2x32xf32>
    %51 = vector.extract_strided_slice %7 {offsets = [0, 2, 0], sizes = [2, 1, 128], strides = [1, 1, 1]} : vector<2x8x128xf32> to vector<2x1x128xf32>
    %52 = vector.shape_cast %51 : vector<2x1x128xf32> to vector<2x128xf32>
    %cst_13 = arith.constant dense<0.000000e+00> : vector<2x128xf32>
    %53 = tpu.matmul %50, %8, %cst_13 {dimension_numbers = #tpu.dot_dimension_numbers<[1], [0], [0], [1], [0, 0, 1, 1], [], []>} : vector<2x32xf32>, vector<32x128xf32>, vector<2x128xf32> -> vector<2x128xf32>
    %54 = arith.addf %52, %53 : vector<2x128xf32>
    %55 = vector.extract_strided_slice %54 {offsets = [0, 0], sizes = [2, 96], strides = [1, 1]} : vector<2x128xf32> to vector<2x96xf32>
    %56 = arith.negf %55 : vector<2x96xf32>
    %57 = math.exp %56 : vector<2x96xf32>
    %cst_14 = arith.constant 1.000000e+00 : f32
    %58 = vector.broadcast %cst_14 : f32 to vector<2x96xf32>
    %59 = arith.addf %58, %57 : vector<2x96xf32>
    %60 = arith.divf %58, %59 : vector<2x96xf32>
    %61 = vector.extract_strided_slice %60 {offsets = [0, 0], sizes = [2, 32], strides = [1, 1]} : vector<2x96xf32> to vector<2x32xf32>
    %62 = vector.extract_strided_slice %60 {offsets = [0, 32], sizes = [2, 32], strides = [1, 1]} : vector<2x96xf32> to vector<2x32xf32>
    %63 = vector.extract_strided_slice %60 {offsets = [0, 64], sizes = [2, 32], strides = [1, 1]} : vector<2x96xf32> to vector<2x32xf32>
    %64 = vector.extract_strided_slice %54 {offsets = [0, 96], sizes = [2, 32], strides = [1, 1]} : vector<2x128xf32> to vector<2x32xf32>
    %65 = math.tanh %64 : vector<2x32xf32>
    %66 = arith.mulf %61, %48 : vector<2x32xf32>
    %67 = arith.mulf %62, %65 : vector<2x32xf32>
    %68 = arith.addf %66, %67 : vector<2x32xf32>
    %69 = math.tanh %68 : vector<2x32xf32>
    %70 = arith.mulf %63, %69 : vector<2x32xf32>
    %71 = vector.extract_strided_slice %7 {offsets = [0, 3, 0], sizes = [2, 1, 128], strides = [1, 1, 1]} : vector<2x8x128xf32> to vector<2x1x128xf32>
    %72 = vector.shape_cast %71 : vector<2x1x128xf32> to vector<2x128xf32>
    %cst_15 = arith.constant dense<0.000000e+00> : vector<2x128xf32>
    %73 = tpu.matmul %70, %8, %cst_15 {dimension_numbers = #tpu.dot_dimension_numbers<[1], [0], [0], [1], [0, 0, 1, 1], [], []>} : vector<2x32xf32>, vector<32x128xf32>, vector<2x128xf32> -> vector<2x128xf32>
    %74 = arith.addf %72, %73 : vector<2x128xf32>
    %75 = vector.extract_strided_slice %74 {offsets = [0, 0], sizes = [2, 96], strides = [1, 1]} : vector<2x128xf32> to vector<2x96xf32>
    %76 = arith.negf %75 : vector<2x96xf32>
    %77 = math.exp %76 : vector<2x96xf32>
    %cst_16 = arith.constant 1.000000e+00 : f32
    %78 = vector.broadcast %cst_16 : f32 to vector<2x96xf32>
    %79 = arith.addf %78, %77 : vector<2x96xf32>
    %80 = arith.divf %78, %79 : vector<2x96xf32>
    %81 = vector.extract_strided_slice %80 {offsets = [0, 0], sizes = [2, 32], strides = [1, 1]} : vector<2x96xf32> to vector<2x32xf32>
    %82 = vector.extract_strided_slice %80 {offsets = [0, 32], sizes = [2, 32], strides = [1, 1]} : vector<2x96xf32> to vector<2x32xf32>
    %83 = vector.extract_strided_slice %80 {offsets = [0, 64], sizes = [2, 32], strides = [1, 1]} : vector<2x96xf32> to vector<2x32xf32>
    %84 = vector.extract_strided_slice %74 {offsets = [0, 96], sizes = [2, 32], strides = [1, 1]} : vector<2x128xf32> to vector<2x32xf32>
    %85 = math.tanh %84 : vector<2x32xf32>
    %86 = arith.mulf %81, %68 : vector<2x32xf32>
    %87 = arith.mulf %82, %85 : vector<2x32xf32>
    %88 = arith.addf %86, %87 : vector<2x32xf32>
    %89 = math.tanh %88 : vector<2x32xf32>
    %90 = arith.mulf %83, %89 : vector<2x32xf32>
    %91 = vector.extract_strided_slice %7 {offsets = [0, 4, 0], sizes = [2, 1, 128], strides = [1, 1, 1]} : vector<2x8x128xf32> to vector<2x1x128xf32>
    %92 = vector.shape_cast %91 : vector<2x1x128xf32> to vector<2x128xf32>
    %cst_17 = arith.constant dense<0.000000e+00> : vector<2x128xf32>
    %93 = tpu.matmul %90, %8, %cst_17 {dimension_numbers = #tpu.dot_dimension_numbers<[1], [0], [0], [1], [0, 0, 1, 1], [], []>} : vector<2x32xf32>, vector<32x128xf32>, vector<2x128xf32> -> vector<2x128xf32>
    %94 = arith.addf %92, %93 : vector<2x128xf32>
    %95 = vector.extract_strided_slice %94 {offsets = [0, 0], sizes = [2, 96], strides = [1, 1]} : vector<2x128xf32> to vector<2x96xf32>
    %96 = arith.negf %95 : vector<2x96xf32>
    %97 = math.exp %96 : vector<2x96xf32>
    %cst_18 = arith.constant 1.000000e+00 : f32
    %98 = vector.broadcast %cst_18 : f32 to vector<2x96xf32>
    %99 = arith.addf %98, %97 : vector<2x96xf32>
    %100 = arith.divf %98, %99 : vector<2x96xf32>
    %101 = vector.extract_strided_slice %100 {offsets = [0, 0], sizes = [2, 32], strides = [1, 1]} : vector<2x96xf32> to vector<2x32xf32>
    %102 = vector.extract_strided_slice %100 {offsets = [0, 32], sizes = [2, 32], strides = [1, 1]} : vector<2x96xf32> to vector<2x32xf32>
    %103 = vector.extract_strided_slice %100 {offsets = [0, 64], sizes = [2, 32], strides = [1, 1]} : vector<2x96xf32> to vector<2x32xf32>
    %104 = vector.extract_strided_slice %94 {offsets = [0, 96], sizes = [2, 32], strides = [1, 1]} : vector<2x128xf32> to vector<2x32xf32>
    %105 = math.tanh %104 : vector<2x32xf32>
    %106 = arith.mulf %101, %88 : vector<2x32xf32>
    %107 = arith.mulf %102, %105 : vector<2x32xf32>
    %108 = arith.addf %106, %107 : vector<2x32xf32>
    %109 = math.tanh %108 : vector<2x32xf32>
    %110 = arith.mulf %103, %109 : vector<2x32xf32>
    %111 = vector.extract_strided_slice %7 {offsets = [0, 5, 0], sizes = [2, 1, 128], strides = [1, 1, 1]} : vector<2x8x128xf32> to vector<2x1x128xf32>
    %112 = vector.shape_cast %111 : vector<2x1x128xf32> to vector<2x128xf32>
    %cst_19 = arith.constant dense<0.000000e+00> : vector<2x128xf32>
    %113 = tpu.matmul %110, %8, %cst_19 {dimension_numbers = #tpu.dot_dimension_numbers<[1], [0], [0], [1], [0, 0, 1, 1], [], []>} : vector<2x32xf32>, vector<32x128xf32>, vector<2x128xf32> -> vector<2x128xf32>
    %114 = arith.addf %112, %113 : vector<2x128xf32>
    %115 = vector.extract_strided_slice %114 {offsets = [0, 0], sizes = [2, 96], strides = [1, 1]} : vector<2x128xf32> to vector<2x96xf32>
    %116 = arith.negf %115 : vector<2x96xf32>
    %117 = math.exp %116 : vector<2x96xf32>
    %cst_20 = arith.constant 1.000000e+00 : f32
    %118 = vector.broadcast %cst_20 : f32 to vector<2x96xf32>
    %119 = arith.addf %118, %117 : vector<2x96xf32>
    %120 = arith.divf %118, %119 : vector<2x96xf32>
    %121 = vector.extract_strided_slice %120 {offsets = [0, 0], sizes = [2, 32], strides = [1, 1]} : vector<2x96xf32> to vector<2x32xf32>
    %122 = vector.extract_strided_slice %120 {offsets = [0, 32], sizes = [2, 32], strides = [1, 1]} : vector<2x96xf32> to vector<2x32xf32>
    %123 = vector.extract_strided_slice %120 {offsets = [0, 64], sizes = [2, 32], strides = [1, 1]} : vector<2x96xf32> to vector<2x32xf32>
    %124 = vector.extract_strided_slice %114 {offsets = [0, 96], sizes = [2, 32], strides = [1, 1]} : vector<2x128xf32> to vector<2x32xf32>
    %125 = math.tanh %124 : vector<2x32xf32>
    %126 = arith.mulf %121, %108 : vector<2x32xf32>
    %127 = arith.mulf %122, %125 : vector<2x32xf32>
    %128 = arith.addf %126, %127 : vector<2x32xf32>
    %129 = math.tanh %128 : vector<2x32xf32>
    %130 = arith.mulf %123, %129 : vector<2x32xf32>
    %131 = vector.extract_strided_slice %7 {offsets = [0, 6, 0], sizes = [2, 1, 128], strides = [1, 1, 1]} : vector<2x8x128xf32> to vector<2x1x128xf32>
    %132 = vector.shape_cast %131 : vector<2x1x128xf32> to vector<2x128xf32>
    %cst_21 = arith.constant dense<0.000000e+00> : vector<2x128xf32>
    %133 = tpu.matmul %130, %8, %cst_21 {dimension_numbers = #tpu.dot_dimension_numbers<[1], [0], [0], [1], [0, 0, 1, 1], [], []>} : vector<2x32xf32>, vector<32x128xf32>, vector<2x128xf32> -> vector<2x128xf32>
    %134 = arith.addf %132, %133 : vector<2x128xf32>
    %135 = vector.extract_strided_slice %134 {offsets = [0, 0], sizes = [2, 96], strides = [1, 1]} : vector<2x128xf32> to vector<2x96xf32>
    %136 = arith.negf %135 : vector<2x96xf32>
    %137 = math.exp %136 : vector<2x96xf32>
    %cst_22 = arith.constant 1.000000e+00 : f32
    %138 = vector.broadcast %cst_22 : f32 to vector<2x96xf32>
    %139 = arith.addf %138, %137 : vector<2x96xf32>
    %140 = arith.divf %138, %139 : vector<2x96xf32>
    %141 = vector.extract_strided_slice %140 {offsets = [0, 0], sizes = [2, 32], strides = [1, 1]} : vector<2x96xf32> to vector<2x32xf32>
    %142 = vector.extract_strided_slice %140 {offsets = [0, 32], sizes = [2, 32], strides = [1, 1]} : vector<2x96xf32> to vector<2x32xf32>
    %143 = vector.extract_strided_slice %140 {offsets = [0, 64], sizes = [2, 32], strides = [1, 1]} : vector<2x96xf32> to vector<2x32xf32>
    %144 = vector.extract_strided_slice %134 {offsets = [0, 96], sizes = [2, 32], strides = [1, 1]} : vector<2x128xf32> to vector<2x32xf32>
    %145 = math.tanh %144 : vector<2x32xf32>
    %146 = arith.mulf %141, %128 : vector<2x32xf32>
    %147 = arith.mulf %142, %145 : vector<2x32xf32>
    %148 = arith.addf %146, %147 : vector<2x32xf32>
    %149 = math.tanh %148 : vector<2x32xf32>
    %150 = arith.mulf %143, %149 : vector<2x32xf32>
    %151 = vector.extract_strided_slice %7 {offsets = [0, 7, 0], sizes = [2, 1, 128], strides = [1, 1, 1]} : vector<2x8x128xf32> to vector<2x1x128xf32>
    %152 = vector.shape_cast %151 : vector<2x1x128xf32> to vector<2x128xf32>
    %cst_23 = arith.constant dense<0.000000e+00> : vector<2x128xf32>
    %153 = tpu.matmul %150, %8, %cst_23 {dimension_numbers = #tpu.dot_dimension_numbers<[1], [0], [0], [1], [0, 0, 1, 1], [], []>} : vector<2x32xf32>, vector<32x128xf32>, vector<2x128xf32> -> vector<2x128xf32>
    %154 = arith.addf %152, %153 : vector<2x128xf32>
    %155 = vector.extract_strided_slice %154 {offsets = [0, 0], sizes = [2, 96], strides = [1, 1]} : vector<2x128xf32> to vector<2x96xf32>
    %156 = arith.negf %155 : vector<2x96xf32>
    %157 = math.exp %156 : vector<2x96xf32>
    %cst_24 = arith.constant 1.000000e+00 : f32
    %158 = vector.broadcast %cst_24 : f32 to vector<2x96xf32>
    %159 = arith.addf %158, %157 : vector<2x96xf32>
    %160 = arith.divf %158, %159 : vector<2x96xf32>
    %161 = vector.extract_strided_slice %160 {offsets = [0, 0], sizes = [2, 32], strides = [1, 1]} : vector<2x96xf32> to vector<2x32xf32>
    %162 = vector.extract_strided_slice %160 {offsets = [0, 32], sizes = [2, 32], strides = [1, 1]} : vector<2x96xf32> to vector<2x32xf32>
    %163 = vector.extract_strided_slice %160 {offsets = [0, 64], sizes = [2, 32], strides = [1, 1]} : vector<2x96xf32> to vector<2x32xf32>
    %164 = vector.extract_strided_slice %154 {offsets = [0, 96], sizes = [2, 32], strides = [1, 1]} : vector<2x128xf32> to vector<2x32xf32>
    %165 = math.tanh %164 : vector<2x32xf32>
    %166 = arith.mulf %161, %148 : vector<2x32xf32>
    %167 = arith.mulf %162, %165 : vector<2x32xf32>
    %168 = arith.addf %166, %167 : vector<2x32xf32>
    %169 = math.tanh %168 : vector<2x32xf32>
    %170 = arith.mulf %163, %169 : vector<2x32xf32>
    %171 = vector.extract_strided_slice %30 {offsets = [0, 0], sizes = [1, 32], strides = [1, 1]} : vector<2x32xf32> to vector<1x32xf32>
    %172 = vector.extract_strided_slice %50 {offsets = [0, 0], sizes = [1, 32], strides = [1, 1]} : vector<2x32xf32> to vector<1x32xf32>
    %173 = vector.extract_strided_slice %70 {offsets = [0, 0], sizes = [1, 32], strides = [1, 1]} : vector<2x32xf32> to vector<1x32xf32>
    %174 = vector.extract_strided_slice %90 {offsets = [0, 0], sizes = [1, 32], strides = [1, 1]} : vector<2x32xf32> to vector<1x32xf32>
    %175 = vector.extract_strided_slice %110 {offsets = [0, 0], sizes = [1, 32], strides = [1, 1]} : vector<2x32xf32> to vector<1x32xf32>
    %176 = vector.extract_strided_slice %130 {offsets = [0, 0], sizes = [1, 32], strides = [1, 1]} : vector<2x32xf32> to vector<1x32xf32>
    %177 = vector.extract_strided_slice %150 {offsets = [0, 0], sizes = [1, 32], strides = [1, 1]} : vector<2x32xf32> to vector<1x32xf32>
    %178 = vector.extract_strided_slice %170 {offsets = [0, 0], sizes = [1, 32], strides = [1, 1]} : vector<2x32xf32> to vector<1x32xf32>
    %179 = vector.extract_strided_slice %30 {offsets = [1, 0], sizes = [1, 32], strides = [1, 1]} : vector<2x32xf32> to vector<1x32xf32>
    %180 = vector.extract_strided_slice %50 {offsets = [1, 0], sizes = [1, 32], strides = [1, 1]} : vector<2x32xf32> to vector<1x32xf32>
    %181 = vector.extract_strided_slice %70 {offsets = [1, 0], sizes = [1, 32], strides = [1, 1]} : vector<2x32xf32> to vector<1x32xf32>
    %182 = vector.extract_strided_slice %90 {offsets = [1, 0], sizes = [1, 32], strides = [1, 1]} : vector<2x32xf32> to vector<1x32xf32>
    %183 = vector.extract_strided_slice %110 {offsets = [1, 0], sizes = [1, 32], strides = [1, 1]} : vector<2x32xf32> to vector<1x32xf32>
    %184 = vector.extract_strided_slice %130 {offsets = [1, 0], sizes = [1, 32], strides = [1, 1]} : vector<2x32xf32> to vector<1x32xf32>
    %185 = vector.extract_strided_slice %150 {offsets = [1, 0], sizes = [1, 32], strides = [1, 1]} : vector<2x32xf32> to vector<1x32xf32>
    %186 = vector.extract_strided_slice %170 {offsets = [1, 0], sizes = [1, 32], strides = [1, 1]} : vector<2x32xf32> to vector<1x32xf32>
    %187 = tpu.concatenate %171, %172, %173, %174, %175, %176, %177, %178, %179, %180, %181, %182, %183, %184, %185, %186 in 0 : vector<1x32xf32>, vector<1x32xf32>, vector<1x32xf32>, vector<1x32xf32>, vector<1x32xf32>, vector<1x32xf32>, vector<1x32xf32>, vector<1x32xf32>, vector<1x32xf32>, vector<1x32xf32>, vector<1x32xf32>, vector<1x32xf32>, vector<1x32xf32>, vector<1x32xf32>, vector<1x32xf32>, vector<1x32xf32> -> vector<16x32xf32>
    %c0_25 = arith.constant 0 : index
    %c0_26 = arith.constant 0 : index
    %188 = vector.load %arg5[%c0_25, %c0_26] : memref<32x128xf32, #tpu.memory_space<vmem>>, vector<32x128xf32>
    %cst_27 = arith.constant dense<0.000000e+00> : vector<16x128xf32>
    %189 = tpu.matmul %187, %188, %cst_27 {dimension_numbers = #tpu.dot_dimension_numbers<[1], [0], [0], [1], [0, 0, 1, 1], [], []>} : vector<16x32xf32>, vector<32x128xf32>, vector<16x128xf32> -> vector<16x128xf32>
    %c0_28 = arith.constant 0 : index
    %c0_29 = arith.constant 0 : index
    %190 = vector.load %arg6[%c0_28, %c0_29] : memref<1x128xf32, #tpu.memory_space<vmem>>, vector<1x128xf32>
    %191 = vector.broadcast %190 : vector<1x128xf32> to vector<16x128xf32>
    %192 = arith.addf %189, %191 : vector<16x128xf32>
    %c0_30 = arith.constant 0 : index
    %c0_31 = arith.constant 0 : index
    %193 = vector.load %arg7[%c0_30, %c0_31] : memref<16x128xf32, #tpu.memory_space<vmem>>, vector<16x128xf32>
    tpu.vector_store %arg7[%c0_30, %c0_31], %192 {strides = array<i32>} : memref<16x128xf32, #tpu.memory_space<vmem>>, vector<16x128xf32>,
    return
  }
  func.func @transform_0(%arg0: i32) -> (i32, i32) {
    %c0_i32 = arith.constant 0 : i32
    %c0_i32_0 = arith.constant 0 : i32
    %c0_i32_1 = arith.constant 0 : i32
    return %c0_i32, %c0_i32_0 : i32, i32
  }
  func.func @transform_1(%arg0: i32) -> (i32, i32) {
    %c0_i32 = arith.constant 0 : i32
    %c0_i32_0 = arith.constant 0 : i32
    %c0_i32_1 = arith.constant 0 : i32
    return %c0_i32, %c0_i32_0 : i32, i32
  }
  func.func @transform_2(%arg0: i32) -> (i32, i32) {
    %c0_i32 = arith.constant 0 : i32
    %c0_i32_0 = arith.constant 0 : i32
    %c0_i32_1 = arith.constant 0 : i32
    return %c0_i32, %c0_i32_0 : i32, i32
  }
  func.func @transform_3(%arg0: i32) -> (i32, i32) {
    %c0_i32 = arith.constant 0 : i32
    %c0_i32_0 = arith.constant 0 : i32
    %c0_i32_1 = arith.constant 0 : i32
    return %c0_i32, %c0_i32_0 : i32, i32
  }
  func.func @transform_4(%arg0: i32) -> (i32, i32) {
    %c0_i32 = arith.constant 0 : i32
    %c0_i32_0 = arith.constant 0 : i32
    %c0_i32_1 = arith.constant 0 : i32
    return %c0_i32, %c0_i32_0 : i32, i32
  }
  func.func @transform_5(%arg0: i32) -> (i32, i32) {
    %c0_i32 = arith.constant 0 : i32
    %c0_i32_0 = arith.constant 0 : i32
    %c0_i32_1 = arith.constant 0 : i32
    return %c0_i32, %c0_i32_0 : i32, i32
  }
  func.func @transform_6(%arg0: i32) -> (i32, i32) {
    %c0_i32 = arith.constant 0 : i32
    %c0_i32_0 = arith.constant 0 : i32
    %c0_i32_1 = arith.constant 0 : i32
    return %c0_i32, %c0_i32_0 : i32, i32
  }
}

</mosaic_0001>

<bundles_post_ra>
// kernel: tpu_custom_call.1
= control target key start
LH: loop header
LB: loop body
LE: loop exit
PB: predicated region body
PF: predicated region fallthrough
CT: control target
= control target key end

     0   :  { %11 = vsyncpa [#allocation3], 0  ;;  %s3213_s0 = inlined_call_operand.hbm [shape: f32[16,1280], index: 0, kind: input, shape index: {}]   ;;  %s3214_s1 = inlined_call_operand.hbm [shape: bf16[1280,128], index: 1, kind: input, shape index: {}]   ;;  %s3215_s2 = inlined_call_operand.hbm [shape: f32[32,128], index: 2, kind: input, shape index: {}]   ;;  %s3216_s3 = inlined_call_operand.vmem [shape: f32[1,128], index: 3, kind: input, shape index: {}]   ;;  %s3217_s4 = inlined_call_operand.hbm [shape: f32[32,128], index: 4, kind: input, shape index: {}]   ;;  %s3218_s5 = inlined_call_operand.vmem [shape: f32[1,128], index: 5, kind: input, shape index: {}]   ;;  %s3219_s6 = inlined_call_operand.hbm [shape: f32[16,128], index: 6, kind: output, shape index: {}]  }
   0x1   :  { %12 = vsyncpa [#allocation6], 0 }
   0x2   :  { %13 = vsyncpa [#allocation9], 0 }
   0x3   :  { %14 = vsyncpa [#allocation4], 0  ;;  %s2902_s21 = smov [#allocation5]  }
   0x4   :  { %s32_s22 = sshll.u32 %s2902_s21, 4  ;;  %s33_s22 = int_to_ptr.vmem [resolvable:$true] %s32_s22 }
   0x5   :  { %s2802_s23 = scalar_lea.vmem %s33_s22, 10240  ;;  %p2807_p1 = scmp.lt.s32.totalorder %s33_s22, %s33_s22 }
   0x6   :  { %p2803_p0 = scmp.ne.s32.totalorder %s33_s22, %s2802_s23  ;;  %p2808_p2 = scmp.lt.s32.totalorder %s2802_s23, %s2802_s23 }
   0x8   :  { %p2809_p3 = por %p2808_p2, %p2807_p1 }
   0xa   :  { %p2810_p4 = pnand %p2809_p3, %p2803_p0 }
   0xc   :  { %2813 = shalt.err (!%p2810_p4)
}
   0xd   :  { %s2903_s24 = smov 64   ;;  %s2904_s25 = smov 4  }
   0xe   :  { %38 = dma.hbm_to_vmem [thread:$0]  %s3214_s1, 10240, %s33_s22, [#allocation6], %s2903_s24, %s2903_s24, %s2904_s25  }
   0xf   :  { %s2905_s28 = smov [#allocation2]  }
  0x10   :  { %s20_s29 = sshll.u32 %s2905_s28, 4  ;;  %s21_s29 = int_to_ptr.vmem [resolvable:$true] %s20_s29 }
  0x11   :  { %s2822_s30 = scalar_lea.vmem %s21_s29, 2560  ;;  %p2827_p6 = scmp.lt.s32.totalorder %s21_s29, %s21_s29 }
  0x12   :  { %p2823_p5 = scmp.ne.s32.totalorder %s21_s29, %s2822_s30  ;;  %p2828_p7 = scmp.lt.s32.totalorder %s2822_s30, %s2822_s30 }
  0x14   :  { %p2829_p8 = por %p2828_p7, %p2827_p6 }
  0x16   :  { %p2830_p9 = pnand %p2829_p8, %p2823_p5 }
  0x18   :  { %2833 = shalt.err (!%p2830_p9)
}
  0x19   :  { %s2906_s7 = smov 1280   ;;  %s2907_s8 = smov 80  }
  0x1a   :  { %26 = dma.hbm_to_vmem [thread:$0]  %s3213_s0, 2560, %s21_s29, [#allocation3], %s2906_s7, %s2906_s7, %s2907_s8  }
  0x1b   :  { %s2908_s11 = smov [#allocation7]  }
  0x1c   :  { %s44_s12 = sshll.u32 %s2908_s11, 4  ;;  %s45_s12 = int_to_ptr.vmem [resolvable:$true] %s44_s12 }
  0x1d   :  { %s2842_s1 = scalar_lea.vmem %s45_s12, 512  ;;  %p2847_p11 = scmp.lt.s32.totalorder %s45_s12, %s45_s12 }
  0x1e   :  { %p2843_p10 = scmp.ne.s32.totalorder %s45_s12, %s2842_s1  ;;  %p2848_p12 = scmp.lt.s32.totalorder %s2842_s1, %s2842_s1 }
  0x20   :  { %p2849_p13 = por %p2848_p12, %p2847_p11 }
  0x22   :  { %p2850_p0 = pnand %p2849_p13, %p2843_p10 }
  0x24   :  { %2853 = shalt.err (!%p2850_p0)
}
  0x25   :  { %s2909_s13 = smov 128   ;;  %s2910_s14 = smov 8  }
  0x26   :  { %50 = dma.hbm_to_vmem [thread:$0]  %s3215_s2, 512, %s45_s12, [#allocation6], %s2909_s13, %s2909_s13, %s2910_s14  }
  0x27   :  { %s2911_s0 = smov [#allocation8]  }
  0x28   :  { %s58_s17 = sshll.u32 %s2911_s0, 4  ;;  %s59_s17 = int_to_ptr.vmem [resolvable:$true] %s58_s17 }
  0x29   :  { %s2862_s18 = scalar_lea.vmem %s59_s17, 512  ;;  %p2867_p2 = scmp.lt.s32.totalorder %s59_s17, %s59_s17 }
  0x2a   :  { %p2863_p1 = scmp.ne.s32.totalorder %s59_s17, %s2862_s18  ;;  %p2868_p3 = scmp.lt.s32.totalorder %s2862_s18, %s2862_s18 }
  0x2c   :  { %p2869_p4 = por %p2868_p3, %p2867_p2 }
  0x2e   :  { %p2870_p5 = pnand %p2869_p4, %p2863_p1 }
  0x30   :  { %2873 = shalt.err (!%p2870_p5)
}
  0x31   :  { %64 = dma.hbm_to_vmem [thread:$0]  %s3217_s4, 512, %s59_s17, [#allocation9], %s2909_s13, %s2909_s13, %s2910_s14  }
  0x32   :  { %2894 = dma.done.wait [#allocation3], 2560  }
  0x33   :  { %2895 = vsyncadd [#allocation3], 4294964736 }
  0x34   :  { %2896 = dma.done.wait [#allocation6], 10752  }
  0x35   :  { %2897 = vsyncadd [#allocation6], 4294956544 }
  0x36   :  { %2898 = dma.done.wait [#allocation9], 512  }
  0x37   :  { %2899 = vsyncadd [#allocation9], 4294966784  ;;  %v2586_v0 = vld [vmem:[#allocation5 + $0x78] sm:$0xff]   ;;  %v2590_v4 = vld [vmem:[#allocation5 + $0x70] sm:$0xff]   ;;  %vm2913_vm0 = vmmov 0   ;;  %vm1097_vm1 = vcmask 1041409  }
  0x38   :  { %v2587_v1 = vld [vmem:[#allocation5 + $0x38] sm:$0xff]   ;;  %2317 = vmatprep.subr.bf16.mxu0 %v2586_v0  ;;  %v2591_v5 = vld [vmem:[#allocation5 + $0x30] sm:$0xff]   ;;  %v2594_v8 = vld [vmem:[#allocation5 + $0x68] sm:$0xff]   ;;  %vm966_vm2 = vcmask 261120   ;;  %vm2072_vm3 = vcmask 1040384   ;;  %vm2074_vm4 = vcmask 1041408  }
  0x39   :  { %v2588_v2 = vld [vmem:[#allocation5 + $0xf8] sm:$0xff]   ;;  %2318 = vmatpush3.bf16.msra.mxu0 %v2587_v1  ;;  %v2592_v6 = vld [vmem:[#allocation5 + $0xf0] sm:$0xff]   ;;  %v2595_v9 = vld [vmem:[#allocation5 + $0x28] sm:$0xff]   ;;  %vm2076_vm5 = vcmask 1042432   ;;  %vm2078_vm6 = vcmask 1043456   ;;  %vm2080_vm7 = vcmask 1044480  }
  0x3a   :  { %v2589_v3 = vld [vmem:[#allocation5 + $0xb8] sm:$0xff]   ;;  %2339 = vmatprep.subr.bf16.mxu1 %v2588_v2  ;;  %2319 = vmatprep.subr.bf16.mxu0 %v2590_v4  ;;  %v2593_v7 = vld [vmem:[#allocation5 + $0xb0] sm:$0xff]   ;;  %v2596_v10 = vld [vmem:[#allocation5 + $0xe8] sm:$0xff]   ;;  %vm2082_vm8 = vcmask 1045504   ;;  %vm2084_vm9 = vcmask 1046528   ;;  %s2915_s23 = smov [#allocation10]  }
  0x3b   :  { %2340 = vmatpush3.bf16.msra.mxu1 %v2589_v3  ;;  %v2597_v11 = vld [vmem:[#allocation5 + $0xa8] sm:$0xff]   ;;  %v2598_v12 = vld [vmem:[#allocation5 + $0x60] sm:$0xff]   ;;  %v2602_v16 = vld [vmem:[#allocation5 + $0x58] sm:$0xff]   ;;  %s2196_s25 = sshll.u32 %s2915_s23, 4  ;;  %s2197_s25 = int_to_ptr.vmem [resolvable:$true] %s2196_s25 }
  0x3c   :  { %2341 = vmatprep.subr.bf16.mxu1 %v2592_v6  ;;  %v2599_v13 = vld [vmem:[#allocation5 + $0x20] sm:$0xff]   ;;  %v2603_v17 = vld [vmem:[#allocation5 + $0x18] sm:$0xff]   ;;  %v2606_v20 = vld [vmem:[#allocation5 + $0x50] sm:$0xff]   ;;  %p2879_p7 = scmp.lt.s32.totalorder %s2197_s25, %s2197_s25 }
  0x3d   :  { %2320 = vmatpush3.bf16.msra.mxu0 %v2591_v5  ;;  %v2600_v14 = vld [vmem:[#allocation5 + $0xe0] sm:$0xff]   ;;  %v2604_v18 = vld [vmem:[#allocation5 + $0xd8] sm:$0xff]   ;;  %v2607_v21 = vld [vmem:[#allocation5 + $0x10] sm:$0xff]  }
  0x3e   :  { %2321 = vmatprep.subr.bf16.mxu0 %v2594_v8  ;;  %v2601_v15 = vld [vmem:[#allocation5 + $0xa0] sm:$0xff]   ;;  %v2605_v19 = vld [vmem:[#allocation5 + $0x98] sm:$0xff]   ;;  %v2608_v22 = vld [vmem:[#allocation5 + $0xd0] sm:$0xff]  }
  0x3f   :  { %2342 = vmatpush3.bf16.msra.mxu1 %v2593_v7  ;;  %v2609_v23 = vld [vmem:[#allocation5 + $0x90] sm:$0xff]   ;;  %v2610_v24 = vld [vmem:[#allocation5 + $0x48] sm:$0xff]   ;;  %v2614_v28 = vld [vmem:[#allocation5 + $0x40] sm:$0xff]  }
  0x40   :  { %2343 = vmatprep.subr.bf16.mxu1 %v2596_v10  ;;  %v2611_v25 = vld [vmem:[#allocation5 + $0x8] sm:$0xff]   ;;  %v2615_v29 = vld [vmem:[#allocation5] sm:$0xff]   ;;  %v91_v32 = vld [vmem:[#allocation2 + $0x58] sm:$0xff] }
  0x41   :  { %2322 = vmatpush3.bf16.msra.mxu0 %v2595_v9  ;;  %v2612_v26 = vld [vmem:[#allocation5 + $0xc8] sm:$0xff]   ;;  %v2616_v30 = vld [vmem:[#allocation5 + $0xc0] sm:$0xff]   ;;  %v90_v36 = vld [vmem:[#allocation2 + $0x50] sm:$0xff] }
  0x42   :  { %2323 = vmatprep.subr.bf16.mxu0 %v2598_v12  ;;  %v2613_v27 = vld [vmem:[#allocation5 + $0x88] sm:$0xff]   ;;  %v2617_v34 = vld [vmem:[#allocation5 + $0x80] sm:$0xff]   ;;  %v2618_v38 = vld [vmem:[#allocation5 + $0x178] sm:$0xff]  }
  0x43   :  { %2344 = vmatpush3.bf16.msra.mxu1 %v2597_v11  ;;  %v81_v31 = vld [vmem:[#allocation2 + $0x8] sm:$0xff]  ;;  %v80_v35 = vld [vmem:[#allocation2] sm:$0xff]  ;;  %v83_v39 = vld [vmem:[#allocation2 + $0x18] sm:$0xff] }
  0x44   :  { %2345 = vmatprep.subr.bf16.mxu1 %v2600_v14  ;;  %v101_v33 = vpack.c.bf16 %v91_v32, %v81_v31  ;;  %v100_v37 = vpack.c.bf16 %v90_v36, %v80_v35  ;;  %v93_v40 = vld [vmem:[#allocation2 + $0x68] sm:$0xff]  ;;  %v2619_v42 = vld [vmem:[#allocation5 + $0x138] sm:$0xff]   ;;  %v82_v43 = vld [vmem:[#allocation2 + $0x10] sm:$0xff] }
  0x45   :  { %2324 = vmatpush3.bf16.msra.mxu0 %v2599_v13  ;;  %v103_v41 = vpack.c.bf16 %v93_v40, %v83_v39  ;;  %v92_v44 = vld [vmem:[#allocation2 + $0x60] sm:$0xff]  ;;  %v2620_v46 = vld [vmem:[#allocation5 + $0x1f8] sm:$0xff]   ;;  %v2622_v48 = vld [vmem:[#allocation5 + $0x170] sm:$0xff]  }
  0x46   :  { %2325 = vmatprep.subr.bf16.mxu0 %v2602_v16  ;;  %789 = vmatprep.mubr.bf16.mxu0 %v101_v33  ;;  %v102_v45 = vpack.c.bf16 %v92_v44, %v82_v43  ;;  %v2621_v47 = vld [vmem:[#allocation5 + $0x1b8] sm:$0xff]   ;;  %v2623_v49 = vld [vmem:[#allocation5 + $0x130] sm:$0xff]   ;;  %v2626_v52 = vld [vmem:[#allocation5 + $0x168] sm:$0xff]  }
  0x47   :  { %2346 = vmatpush3.bf16.msra.mxu1 %v2601_v15  ;;  %830 = vmatprep.mubr.bf16.mxu1 %v103_v41  ;;  %v2624_v50 = vld [vmem:[#allocation5 + $0x1f0] sm:$0xff]   ;;  %v2627_v53 = vld [vmem:[#allocation5 + $0x128] sm:$0xff]   ;;  %v2630_v56 = vld [vmem:[#allocation5 + $0x160] sm:$0xff]  }
  0x48   :  { %2347 = vmatprep.subr.bf16.mxu1 %v2604_v18  ;;  %v2625_v51 = vld [vmem:[#allocation5 + $0x1b0] sm:$0xff]   ;;  %v2628_v54 = vld [vmem:[#allocation5 + $0x1e8] sm:$0xff]   ;;  %v2631_v57 = vld [vmem:[#allocation5 + $0x120] sm:$0xff]  }
  0x49   :  { %2326 = vmatpush3.bf16.msra.mxu0 %v2603_v17  ;;  %v2629_v55 = vld [vmem:[#allocation5 + $0x1a8] sm:$0xff]   ;;  %v2632_v58 = vld [vmem:[#allocation5 + $0x1e0] sm:$0xff]   ;;  %v2634_v60 = vld [vmem:[#allocation5 + $0x158] sm:$0xff]  }
  0x4a   :  { %2327 = vmatprep.subr.bf16.mxu0 %v2606_v20  ;;  %v2633_v59 = vld [vmem:[#allocation5 + $0x1a0] sm:$0xff]   ;;  %v2635_v61 = vld [vmem:[#allocation5 + $0x118] sm:$0xff]   ;;  %v2638_v0 = vld [vmem:[#allocation5 + $0x150] sm:$0xff]  }
  0x4b   :  { %2348 = vmatpush3.bf16.msra.mxu1 %v2605_v19  ;;  %v2636_v62 = vld [vmem:[#allocation5 + $0x1d8] sm:$0xff]   ;;  %v2639_v1 = vld [vmem:[#allocation5 + $0x110] sm:$0xff]   ;;  %v2642_v4 = vld [vmem:[#allocation5 + $0x148] sm:$0xff]  }
  0x4c   :  { %2349 = vmatprep.subr.bf16.mxu1 %v2608_v22  ;;  %v2637_v63 = vld [vmem:[#allocation5 + $0x198] sm:$0xff]   ;;  %v2640_v2 = vld [vmem:[#allocation5 + $0x1d0] sm:$0xff]   ;;  %v2643_v5 = vld [vmem:[#allocation5 + $0x108] sm:$0xff]  }
  0x4d   :  { %2328 = vmatpush3.bf16.msra.mxu0 %v2607_v21  ;;  %v2641_v3 = vld [vmem:[#allocation5 + $0x190] sm:$0xff]   ;;  %v2644_v6 = vld [vmem:[#allocation5 + $0x1c8] sm:$0xff]   ;;  %v2646_v8 = vld [vmem:[#allocation5 + $0x140] sm:$0xff]  }
  0x4e   :  { %2329 = vmatprep.subr.bf16.mxu0 %v2610_v24  ;;  %v2645_v7 = vld [vmem:[#allocation5 + $0x188] sm:$0xff]   ;;  %v2647_v9 = vld [vmem:[#allocation5 + $0x100] sm:$0xff]   ;;  %v95_v12 = vld [vmem:[#allocation2 + $0x78] sm:$0xff] }
  0x4f   :  { %2350 = vmatpush3.bf16.msra.mxu1 %v2609_v23  ;;  %v2648_v10 = vld [vmem:[#allocation5 + $0x1c0] sm:$0xff]   ;;  %v85_v11 = vld [vmem:[#allocation2 + $0x28] sm:$0xff]  ;;  %v94_v16 = vld [vmem:[#allocation2 + $0x70] sm:$0xff] }
  0x50   :  { %2351 = vmatprep.subr.bf16.mxu1 %v2612_v26  ;;  %v105_v13 = vpack.c.bf16 %v95_v12, %v85_v11  ;;  %v2649_v14 = vld [vmem:[#allocation5 + $0x180] sm:$0xff]   ;;  %v2650_v18 = vld [vmem:[#allocation5 + $0x278] sm:$0xff]   ;;  %v97_v20 = vld [vmem:[#allocation2 + $0x88] sm:$0xff] }
  0x51   :  { %2330 = vmatpush3.bf16.msra.mxu0 %v2611_v25  ;;  %v84_v15 = vld [vmem:[#allocation2 + $0x20] sm:$0xff]  ;;  %v87_v19 = vld [vmem:[#allocation2 + $0x38] sm:$0xff]  ;;  %v86_v23 = vld [vmem:[#allocation2 + $0x30] sm:$0xff]  ;;  %v2912_v25 = vmov 0.0  }
  0x52   :  { %2331 = vmatprep.subr.bf16.mxu0 %v2614_v28  ;;  %v104_v17 = vpack.c.bf16 %v94_v16, %v84_v15  ;;  %v107_v21 = vpack.c.bf16 %v97_v20, %v87_v19  ;;  %v2651_v22 = vld [vmem:[#allocation5 + $0x238] sm:$0xff]   ;;  %v96_v24 = vld [vmem:[#allocation2 + $0x80] sm:$0xff]  ;;  %v2653_v28 = vld [vmem:[#allocation5 + $0x230] sm:$0xff]  }
  0x53   :  { %2352 = vmatpush3.bf16.msra.mxu1 %v2613_v27  ;;  %v106_v26 = vpack.c.bf16 %v96_v24, %v86_v23  ;;  %v2652_v27 = vld [vmem:[#allocation5 + $0x270] sm:$0xff]   ;;  %v2656_v31 = vld [vmem:[#allocation5 + $0x260] sm:$0xff]   ;;  %v2658_v33 = vld [vmem:[#allocation5 + $0x258] sm:$0xff]  }
  0x54   :  { %2353 = vmatprep.subr.bf16.mxu1 %v2616_v30  ;;  %v2655_v30 = vld [vmem:[#allocation5 + $0x228] sm:$0xff]   ;;  %v2657_v32 = vld [vmem:[#allocation5 + $0x220] sm:$0xff]   ;;  %v2660_v35 = vld [vmem:[#allocation5 + $0x250] sm:$0xff]  }
  0x55   :  { %2332 = vmatpush3.bf16.msra.mxu0 %v2615_v29  ;;  %v2654_v29 = vld [vmem:[#allocation5 + $0x268] sm:$0xff]   ;;  %v2974_v39 = vld [vmem:[#allocation7 + $0x18] sm:$0xff]  ;;  %v2977_v40 = vld [vmem:[#allocation7 + $0x10] sm:$0xff] }
  0x56   :  { %2361 = vmatprep.subr.bf16.mxu0 %v2618_v38  ;;  %v89_v36 = vld [vmem:[#allocation2 + $0x48] sm:$0xff]  ;;  %v2661_v41 = vld [vmem:[#allocation5 + $0x210] sm:$0xff]   ;;  %v2984_v44 = vld [vmem:[#allocation7] sm:$0xff] }
  0x57   :  { %2354 = vmatpush3.bf16.msra.mxu1 %v2617_v34  ;;  %v2659_v34 = vld [vmem:[#allocation5 + $0x218] sm:$0xff]   ;;  %v2980_v43 = vld [vmem:[#allocation7 + $0x8] sm:$0xff] }
  0x58   :  { %790 = vmatmul.mubr.bf16.vlgmr.msra.gmra.mxu0 %v100_v37  ;;  %2383 = vmatprep.subr.bf16.mxu1 %v2620_v46  ;;  %v99_v37 = vld [vmem:[#allocation2 + $0x98] sm:$0xff]  ;;  %v2664_v46 = vld [vmem:[#allocation5 + $0x240] sm:$0xff]  }
  0x59   :  { %2362 = vmatpush3.bf16.msra.mxu0 %v2619_v42  ;;  %871 = vmatprep.mubr.bf16.mxu0 %v105_v13  ;;  %v109_v38 = vpack.c.bf16 %v99_v37, %v89_v36  ;;  %v2662_v42 = vld [vmem:[#allocation5 + $0x248] sm:$0xff]  }
  0x5a   :  { %831 = vmatmul.mubr.bf16.vlgmr.msra.gmra.mxu1 %v102_v45  ;;  %2363 = vmatprep.subr.bf16.mxu0 %v2622_v48  ;;  %v2663_v45 = vld [vmem:[#allocation5 + $0x208] sm:$0xff]   ;;  %v88_v48 = vld [vmem:[#allocation2 + $0x40] sm:$0xff] }
  0x5b   :  { %2384 = vmatpush3.bf16.msra.mxu1 %v2621_v47  ;;  %912 = vmatprep.mubr.bf16.mxu1 %v107_v21  ;;  %v2665_v47 = vld [vmem:[#allocation5 + $0x200] sm:$0xff]  }
  0x5c   :  { %2385 = vmatprep.subr.bf16.mxu1 %v2624_v50 }
  0x5d   :  { %2364 = vmatpush3.bf16.msra.mxu0 %v2623_v49  ;;  %v98_v49 = vld [vmem:[#allocation2 + $0x90] sm:$0xff] }
  0x5e   :  { %2365 = vmatprep.subr.bf16.mxu0 %v2626_v52  ;;  %v108_v50 = vpack.c.bf16 %v98_v49, %v88_v48 }
  0x5f   :  { %2386 = vmatpush3.bf16.msra.mxu1 %v2625_v51 }
  0x60   :  { %2387 = vmatprep.subr.bf16.mxu1 %v2628_v54 }
  0x61   :  { %2366 = vmatpush3.bf16.msra.mxu0 %v2627_v53 }
  0x62   :  { %2367 = vmatprep.subr.bf16.mxu0 %v2630_v56 }
  0x63   :  { %2388 = vmatpush3.bf16.msra.mxu1 %v2629_v55 }
  0x64   :  { %2389 = vmatprep.subr.bf16.mxu1 %v2632_v58 }
  0x65   :  { %2368 = vmatpush3.bf16.msra.mxu0 %v2631_v57 }
  0x66   :  { %2369 = vmatprep.subr.bf16.mxu0 %v2634_v60 }
  0x67   :  { %2390 = vmatpush3.bf16.msra.mxu1 %v2633_v59 }
  0x68   :  { %2391 = vmatprep.subr.bf16.mxu1 %v2636_v62 }
  0x69   :  { %2370 = vmatpush3.bf16.msra.mxu0 %v2635_v61 }
  0x6a   :  { %2371 = vmatprep.subr.bf16.mxu0 %v2638_v0 }
  0x6b   :  { %2392 = vmatpush3.bf16.msra.mxu1 %v2637_v63 }
  0x6c   :  { %2393 = vmatprep.subr.bf16.mxu1 %v2640_v2 }
  0x6d   :  { %2372 = vmatpush3.bf16.msra.mxu0 %v2639_v1 }
  0x6e   :  { %2373 = vmatprep.subr.bf16.mxu0 %v2642_v4 }
  0x6f   :  { %2394 = vmatpush3.bf16.msra.mxu1 %v2641_v3 }
  0x70   :  { %2395 = vmatprep.subr.bf16.mxu1 %v2644_v6 }
  0x71   :  { %2374 = vmatpush3.bf16.msra.mxu0 %v2643_v5  ;;  %v2210_v5 = vld [vmem:[%s3216_s3] ss:$0 sm:$0xff]  ;;  %s2914_s3 = smov 96  }
  0x72   :  { %2375 = vmatprep.subr.bf16.mxu0 %v2646_v8 }
  0x73   :  { %2396 = vmatpush3.bf16.msra.mxu1 %v2645_v7 }
  0x74   :  { %2397 = vmatprep.subr.bf16.mxu1 %v2648_v10 }
  0x75   :  { %2376 = vmatpush3.bf16.msra.mxu0 %v2647_v9 }
  0x76   :  { %2405 = vmatprep.subr.bf16.mxu0 %v2650_v18 }
  0x77   :  { %2398 = vmatpush3.bf16.msra.mxu1 %v2649_v14 }
  0x78   :  { %872 = vmatmul.mubr.bf16.vlgmr.msra.gmra.mxu0 %v104_v17  ;;  %2473 = vmatprep.subr.mxu1 %v2912_v25 }
  0x79   :  { %2406 = vmatpush3.bf16.msra.mxu0 %v2651_v22  ;;  %953 = vmatprep.mubr.bf16.mxu0 %v109_v38 }
  0x7a   :  { %913 = vmatmul.mubr.bf16.vlgmr.msra.gmra.mxu1 %v106_v26  ;;  %2407 = vmatprep.subr.bf16.mxu0 %v2652_v27 }
  0x7b   :  { %2481 = vmatprep.mubr.msk.f32.mxu1 %vm2913_vm0, %v2912_v25  ;;  %2474 = vmatpush3.msra.mxu1 %v2974_v39 }
  0x7c   :  { %2475 = vmatprep.subr.mxu1 %v2912_v25 }
  0x7d   :  { %2408 = vmatpush3.bf16.msra.mxu0 %v2653_v28  ;;  %2476 = vmatpush3.msra.mxu1 %v2977_v40 }
  0x7e   :  { %2409 = vmatprep.subr.bf16.mxu0 %v2654_v29  ;;  %2477 = vmatprep.subr.mxu1 %v2912_v25 }
  0x7f   :  { %2478 = vmatpush3.msra.mxu1 %v2980_v43 }
  0x80   :  { %2479 = vmatprep.subr.mxu1 %v2912_v25 }
  0x81   :  { %2410 = vmatpush3.bf16.msra.mxu0 %v2655_v30  ;;  %2480 = vmatpush3.msra.mxu1 %v2984_v44 }
  0x82   :  { %2411 = vmatprep.subr.bf16.mxu0 %v2656_v31  ;;  %2482 = vmatmul.mubr.f32.vlgmr.msra.gmra.mxu1 %v2912_v25 }
  0x83   :  { %2484 = vmatprep.subr.mxu1 %v2912_v25  ;;  %2492 = vmatprep.mubr.msk.f32.mxu1 %vm2913_vm0, %v2912_v25 }
  0x84   :  { %2485 = vmatpush3.msra.mxu1 %v2974_v39 }
  0x85   :  { %2412 = vmatpush3.bf16.msra.mxu0 %v2657_v32  ;;  %2486 = vmatprep.subr.mxu1 %v2912_v25 }
  0x86   :  { %2413 = vmatprep.subr.bf16.mxu0 %v2658_v33  ;;  %2487 = vmatpush3.msra.mxu1 %v2977_v40 }
  0x87   :  { %2488 = vmatprep.subr.mxu1 %v2912_v25 }
  0x88   :  { %2489 = vmatpush3.msra.mxu1 %v2980_v43 }
  0x89   :  { %2414 = vmatpush3.bf16.msra.mxu0 %v2659_v34  ;;  %2490 = vmatprep.subr.mxu1 %v2912_v25 }
  0x8a   :  { %2415 = vmatprep.subr.bf16.mxu0 %v2660_v35  ;;  %2491 = vmatpush3.msra.mxu1 %v2984_v44 }
  0x8b   :  { %2495 = vmatprep.subr.mxu1 %v2912_v25 }
  0x8d   :  { %2416 = vmatpush3.bf16.msra.mxu0 %v2661_v41 }
  0x8e   :  { %2417 = vmatprep.subr.bf16.mxu0 %v2662_v42 }
  0x91   :  { %2418 = vmatpush3.bf16.msra.mxu0 %v2663_v45 }
  0x92   :  { %2419 = vmatprep.subr.bf16.mxu0 %v2664_v46 }
  0x95   :  { %2420 = vmatpush3.bf16.msra.mxu0 %v2665_v47 }
  0x96   :  { %2517 = vmatprep.subr.mxu0 %v2912_v25 }
  0x98   :  { %954 = vmatmul.mubr.bf16.vlgmr.msra.gmra.mxu0 %v108_v50 }
  0x99   :  { %2518 = vmatpush3.msra.mxu0 %v2974_v39  ;;  %2525 = vmatprep.mubr.msk.f32.mxu0 %vm2913_vm0, %v2912_v25 }
  0x9a   :  { %2519 = vmatprep.subr.mxu0 %v2912_v25 }
  0x9b   :  { %2520 = vmatpush3.msra.mxu0 %v2977_v40 }
  0x9c   :  { %2521 = vmatprep.subr.mxu0 %v2912_v25 }
  0x9d   :  { %2522 = vmatpush3.msra.mxu0 %v2980_v43 }
  0x9e   :  { %2523 = vmatprep.subr.mxu0 %v2912_v25 }
  0x9f   :  { %2524 = vmatpush3.msra.mxu0 %v2984_v44 }
  0xa0   :  { %2539 = vmatprep.subr.mxu0 %v2912_v25 }
 0x118   :  { %v2333_v53 = vpop.f32.mrf.mxu0 }
 0x11a   :  { %v2355_v51 = vpop.f32.mrf.mxu1  ;;  %v2334_v55 = vpop.f32.mrf.mxu0 }
 0x11b   :  { %v2335_v3 = vadd.f32 %v2334_v55, %v2333_v53 }
 0x11c   :  { %v2356_v52 = vpop.f32.mrf.mxu1  ;;  %v2336_v57 = vpop.f32.mrf.mxu0 }
 0x11d   :  { %v792_v8 = vadd.f32 %v2335_v3, %v2210_v5  ;;  %v2357_v9 = vadd.f32 %v2356_v52, %v2355_v51 }
 0x11e   :  { %v2358_v54 = vpop.f32.mrf.mxu1  ;;  %v2337_v59 = vpop.f32.mrf.mxu0 }
 0x11f   :  { %v2338_v4 = vadd.f32 %v2337_v59, %v2336_v57  ;;  %v833_v15 = vadd.f32 %v2357_v9, %v792_v8 }
 0x120   :  { %v2359_v56 = vpop.f32.mrf.mxu1 }
 0x121   :  { %v795_v10 = vadd.f32 %v2338_v4, %v2210_v5  ;;  %v2360_v11 = vadd.f32 %v2359_v56, %v2358_v54 }
 0x123   :  { %v836_v16 = vadd.f32 %v2360_v11, %v795_v10 }
 0x138   :  { %v2377_v61 = vpop.f32.mrf.mxu0 }
 0x13a   :  { %v2399_v58 = vpop.f32.mrf.mxu1  ;;  %v2378_v63 = vpop.f32.mrf.mxu0 }
 0x13b   :  { %v2379_v12 = vadd.f32 %v2378_v63, %v2377_v61 }
 0x13c   :  { %v2400_v60 = vpop.f32.mrf.mxu1  ;;  %v2380_v1 = vpop.f32.mrf.mxu0 }
 0x13d   :  { %v874_v18 = vadd.f32 %v2379_v12, %v833_v15  ;;  %v2401_v19 = vadd.f32 %v2400_v60, %v2399_v58 }
 0x13e   :  { %v2402_v62 = vpop.f32.mrf.mxu1  ;;  %v2381_v7 = vpop.f32.mrf.mxu0 }
 0x13f   :  { %v2382_v13 = vadd.f32 %v2381_v7, %v2380_v1  ;;  %v915_v26 = vadd.f32 %v2401_v19, %v874_v18 }
 0x140   :  { %v2403_v0 = vpop.f32.mrf.mxu1 }
 0x141   :  { %v877_v20 = vadd.f32 %v2382_v13, %v836_v16  ;;  %v2404_v21 = vadd.f32 %v2403_v0, %v2402_v62 }
 0x142   :  { %v1036_v2 = vpop.f32.mrf.mxu1 }
 0x143   :  { %v918_v27 = vadd.f32 %v2404_v21, %v877_v20  ;;  %v1041_v29 = vrot.slane %v1036_v2, 1 }
 0x144   :  { %v2483_v6 = vpop.f32.mrf.mxu1 }
 0x158   :  { %v2421_v14 = vpop.f32.mrf.mxu0 }
 0x15a   :  { %v2422_v17 = vpop.f32.mrf.mxu0 }
 0x15b   :  { %v2423_v23 = vadd.f32 %v2422_v17, %v2421_v14 }
 0x15c   :  { %v2424_v22 = vpop.f32.mrf.mxu0 }
 0x15d   :  { %v3015_v30 = vadd.f32 %v2423_v23, %v915_v26 }
 0x15e   :  { %v2425_v24 = vpop.f32.mrf.mxu0 }
 0x15f   :  { %v2426_v28 = vadd.f32 %v2425_v24, %v2424_v22  ;;  %v1044_v33 = vadd.f32 %v1036_v2, %v3015_v30 }
 0x161   :  { %v3017_v31 = vadd.f32 %v2426_v28, %v918_v27  ;;  %v2291_v37 = vmul.f32 -1.442695, %v1044_v33 }
 0x163   :  { %v1045_v32 = vadd.f32 %v1041_v29, %v3017_v31 }
 0x165   :  { %2666 = vtanh.f32 %v1045_v32  ;;  %v2292_v36 = vmul.f32 -1.442695, %v1045_v32 }
 0x166   :  { %2668 = vtanh.f32 %v1044_v33 }
 0x167   :  { %2670 = vpow2.f32 %v2292_v36 }
 0x168   :  { %2672 = vpow2.f32 %v2291_v37 }
 0x172   :  { %v2667_v34 = vpop.eup %2666 }
 0x173   :  { %1066 = vrot.lane.b32.xlu0 %v2667_v34, %s2903_s24  ;;  %v2669_v35 = vpop.eup %2668 }
 0x174   :  { %v2671_v38 = vpop.eup %2670 }
 0x175   :  { %v1053_v41 = vadd.f32 1.0, %v2671_v38  ;;  %v2673_v42 = vpop.eup %2672 }
 0x176   :  { %v1052_v45 = vadd.f32 1.0, %v2673_v42 }
 0x177   :  { %1064 = vrot.lane.b32.xlu0 %v2669_v35, %s2903_s24  ;;  %2674 = vrcp.f32 %v1053_v41 }
 0x178   :  { %2676 = vrcp.f32 %v1052_v45 }
 0x184   :  { %v2675_v46 = vpop.eup %2674 }
 0x185   :  { %v2677_v49 = vpop.eup %2676  ;;  %v1061_v52 = vmul.f32 0.0, %v2675_v46 }
 0x186   :  { %v1060_v55 = vmul.f32 0.0, %v2677_v49 }
 0x1e5   :  { %v1067_v47 = vpop.permute.xlu0 %1066 }
 0x1e6   :  { %v1071_v48 = vmul.f32 %v2675_v46, %v1067_v47 }
 0x1e8   :  { %1076 = vrot.lane.b32.xlu1 %v1071_v48, %s2914_s3 }
 0x1e9   :  { %v1065_v50 = vpop.permute.xlu0 %1064 }
 0x1ea   :  { %v1070_v51 = vmul.f32 %v2677_v49, %v1065_v50 }
 0x1ec   :  { %1074 = vrot.lane.b32.xlu1 %v1070_v51, %s2914_s3 }
 0x25a   :  { %v1077_v53 = vpop.permute.xlu1 %1076 }
 0x25b   :  { %v1081_v54 = vadd.f32 %v1077_v53, %v1061_v52 }
 0x25d   :  { %2678 = vtanh.f32 %v1081_v54  ;;  %v1196_v22 = vrot.slane %v1081_v54, 7 }
 0x25e   :  { %v1075_v56 = vpop.permute.xlu1 %1074 }
 0x25f   :  { %v1080_v57 = vadd.f32 %v1075_v56, %v1060_v55 }
 0x261   :  { %2680 = vtanh.f32 %v1080_v57  ;;  %v1195_v24 = vrot.slane %v1080_v57, 7 }
 0x26a   :  { %v2679_v58 = vpop.eup %2678 }
 0x26b   :  { %1088 = vrot.lane.b32.xlu0 %v2679_v58, %s2903_s24 }
 0x26e   :  { %v2681_v59 = vpop.eup %2680 }
 0x26f   :  { %1086 = vrot.lane.b32.xlu1 %v2681_v59, %s2903_s24 }
 0x2dd   :  { %v1089_v60 = vpop.permute.xlu0 %1088 }
 0x2de   :  { %v3027_v61 = vmul.f32 %v2675_v46, %v1089_v60 }
 0x2e0   :  { %v1096_v63 = vrot.slane %v3027_v61, 7 }
 0x2e1   :  { %v1087_v62 = vpop.permute.xlu1 %1086 }
 0x2e2   :  { %v3030_v0 = vmul.f32 %v2677_v49, %v1087_v62 }
 0x2e4   :  { %v1098_v1 = vsel %vm1097_vm1, %v1096_v63, %v3030_v0 }
 0x2e5   :  { %1099 = vrot.lane.b32.xlu0 %v1098_v1, %s2903_s24 }
 0x357   :  { %v1100_v2 = vpop.permute.xlu0 %1099 }
 0x358   :  { %2493 = vmatmul.mubr.msk.f32.vlgmr.msra.gmra.mxu1 %vm966_vm2, %v1100_v2 }
 0x359   :  { %2496 = vmatpush3.msra.mxu1 %v2974_v39  ;;  %2503 = vmatprep.mubr.msk.f32.mxu1 %vm2913_vm0, %v2912_v25 }
 0x35a   :  { %2497 = vmatprep.subr.mxu1 %v2912_v25 }
 0x35b   :  { %2498 = vmatpush3.msra.mxu1 %v2977_v40 }
 0x35c   :  { %2499 = vmatprep.subr.mxu1 %v2912_v25 }
 0x35d   :  { %2500 = vmatpush3.msra.mxu1 %v2980_v43 }
 0x35e   :  { %2501 = vmatprep.subr.mxu1 %v2912_v25 }
 0x35f   :  { %2502 = vmatpush3.msra.mxu1 %v2984_v44 }
 0x360   :  { %2506 = vmatprep.subr.mxu1 %v2912_v25 }
 0x418   :  { %v1169_v3 = vpop.f32.mrf.mxu1 }
 0x419   :  { %v1174_v4 = vrot.slane %v1169_v3, 7  ;;  %v1178_v5 = vadd.f32 %v1169_v3, %v3017_v31 }
 0x41a   :  { %v2494_v6 = vpop.f32.mrf.mxu1 }
 0x41b   :  { %v1177_v7 = vadd.f32 %v1174_v4, %v3015_v30  ;;  %2682 = vtanh.f32 %v1178_v5  ;;  %v2295_v10 = vmul.f32 -1.442695, %v1178_v5 }
 0x41d   :  { %2684 = vtanh.f32 %v1177_v7  ;;  %v2294_v11 = vmul.f32 -1.442695, %v1177_v7 }
 0x41e   :  { %2686 = vpow2.f32 %v2295_v10 }
 0x41f   :  { %2688 = vpow2.f32 %v2294_v11 }
 0x428   :  { %v2683_v8 = vpop.eup %2682 }
 0x429   :  { %1205 = vrot.lane.b32.xlu0 %v2683_v8, %s2903_s24 }
 0x42a   :  { %v2685_v9 = vpop.eup %2684 }
 0x42b   :  { %1203 = vrot.lane.b32.xlu1 %v2685_v9, %s2903_s24  ;;  %v2687_v12 = vpop.eup %2686 }
 0x42c   :  { %v2689_v13 = vpop.eup %2688  ;;  %v1186_v14 = vadd.f32 1.0, %v2687_v12 }
 0x42d   :  { %v1185_v15 = vadd.f32 1.0, %v2689_v13 }
 0x42e   :  { %2690 = vrcp.f32 %v1186_v14 }
 0x42f   :  { %2692 = vrcp.f32 %v1185_v15 }
 0x43b   :  { %v2691_v16 = vpop.eup %2690 }
 0x43c   :  { %v2693_v19 = vpop.eup %2692  ;;  %v1200_v23 = vmul.f32 %v2691_v16, %v1196_v22 }
 0x43d   :  { %v1199_v28 = vmul.f32 %v2693_v19, %v1195_v24 }
 0x49b   :  { %v1206_v17 = vpop.permute.xlu0 %1205 }
 0x49c   :  { %v1210_v18 = vmul.f32 %v2691_v16, %v1206_v17 }
 0x49d   :  { %v1204_v20 = vpop.permute.xlu1 %1203 }
 0x49e   :  { %1215 = vrot.lane.b32.xlu0 %v1210_v18, %s2914_s3  ;;  %v1209_v21 = vmul.f32 %v2693_v19, %v1204_v20 }
 0x4a0   :  { %1213 = vrot.lane.b32.xlu1 %v1209_v21, %s2914_s3 }
 0x510   :  { %v1216_v26 = vpop.permute.xlu0 %1215 }
 0x511   :  { %v1220_v27 = vadd.f32 %v1216_v26, %v1200_v23 }
 0x512   :  { %v1214_v29 = vpop.permute.xlu1 %1213 }
 0x513   :  { %2694 = vtanh.f32 %v1220_v27  ;;  %v1219_v32 = vadd.f32 %v1214_v29, %v1199_v28  ;;  %v1335_v5 = vrot.slane %v1220_v27, 7 }
 0x515   :  { %2696 = vtanh.f32 %v1219_v32  ;;  %v1334_v4 = vrot.slane %v1219_v32, 7 }
 0x520   :  { %v2695_v33 = vpop.eup %2694 }
 0x521   :  { %1227 = vrot.lane.b32.xlu0 %v2695_v33, %s2903_s24 }
 0x522   :  { %v2697_v34 = vpop.eup %2696 }
 0x523   :  { %1225 = vrot.lane.b32.xlu1 %v2697_v34, %s2903_s24 }
 0x593   :  { %v1228_v35 = vpop.permute.xlu0 %1227 }
 0x594   :  { %v3056_v38 = vmul.f32 %v2691_v16, %v1228_v35 }
 0x595   :  { %v1226_v36 = vpop.permute.xlu1 %1225 }
 0x596   :  { %v3054_v37 = vmul.f32 %v2693_v19, %v1226_v36  ;;  %v2086_v19 = vsel %vm2072_vm3, %v3027_v61, %v3056_v38 }
 0x598   :  { %v1235_v41 = vrot.slane %v3054_v37, 1  ;;  %v2073_v17 = vsel %vm2072_vm3, %v3030_v0, %v3054_v37 }
 0x59a   :  { %v1236_v42 = vsel %vm1097_vm1, %v3056_v38, %v1235_v41 }
 0x59b   :  { %1237 = vrot.lane.b32.xlu1 %v1236_v42, %s2903_s24 }
 0x60d   :  { %v1238_v45 = vpop.permute.xlu1 %1237 }
 0x60e   :  { %2504 = vmatmul.mubr.msk.f32.vlgmr.msra.gmra.mxu1 %vm966_vm2, %v1238_v45 }
 0x60f   :  { %2507 = vmatpush3.msra.mxu1 %v2974_v39  ;;  %2514 = vmatprep.mubr.msk.f32.mxu1 %vm2913_vm0, %v2912_v25 }
 0x610   :  { %2508 = vmatprep.subr.mxu1 %v2912_v25 }
 0x611   :  { %2509 = vmatpush3.msra.mxu1 %v2977_v40 }
 0x612   :  { %2510 = vmatprep.subr.mxu1 %v2912_v25 }
 0x613   :  { %2511 = vmatpush3.msra.mxu1 %v2980_v43 }
 0x614   :  { %2512 = vmatprep.subr.mxu1 %v2912_v25 }
 0x615   :  { %2513 = vmatpush3.msra.mxu1 %v2984_v44 }
 0x616   :  { %2528 = vmatprep.subr.mxu1 %v2912_v25 }
 0x6ce   :  { %v1307_v46 = vpop.f32.mrf.mxu1 }
 0x6cf   :  { %v1312_v47 = vrot.slane %v1307_v46, 6  ;;  %v1313_v48 = vrot.slane %v1307_v46, 7 }
 0x6d0   :  { %v2505_v49 = vpop.f32.mrf.mxu1 }
 0x6d1   :  { %v1316_v50 = vadd.f32 %v1312_v47, %v3015_v30  ;;  %v1317_v51 = vadd.f32 %v1313_v48, %v3017_v31 }
 0x6d3   :  { %2698 = vtanh.f32 %v1316_v50  ;;  %v2297_v54 = vmul.f32 -1.442695, %v1316_v50  ;;  %v2298_v55 = vmul.f32 -1.442695, %v1317_v51 }
 0x6d4   :  { %2700 = vtanh.f32 %v1317_v51 }
 0x6d5   :  { %2702 = vpow2.f32 %v2297_v54 }
 0x6d6   :  { %2704 = vpow2.f32 %v2298_v55 }
 0x6e0   :  { %v2699_v52 = vpop.eup %2698 }
 0x6e1   :  { %v2701_v53 = vpop.eup %2700  ;;  %1342 = vrot.lane.b32.xlu0 %v2699_v52, %s2903_s24 }
 0x6e2   :  { %1344 = vrot.lane.b32.xlu1 %v2701_v53, %s2903_s24  ;;  %v2703_v56 = vpop.eup %2702 }
 0x6e3   :  { %v2705_v57 = vpop.eup %2704  ;;  %v1324_v58 = vadd.f32 1.0, %v2703_v56 }
 0x6e4   :  { %v1325_v59 = vadd.f32 1.0, %v2705_v57 }
 0x6e5   :  { %2706 = vrcp.f32 %v1324_v58 }
 0x6e6   :  { %2708 = vrcp.f32 %v1325_v59 }
 0x6f2   :  { %v2707_v60 = vpop.eup %2706 }
 0x6f3   :  { %v2709_v63 = vpop.eup %2708  ;;  %v1338_v6 = vmul.f32 %v2707_v60, %v1334_v4 }
 0x6f4   :  { %v1339_v7 = vmul.f32 %v2709_v63, %v1335_v5 }
 0x753   :  { %v1343_v62 = vpop.permute.xlu0 %1342 }
 0x754   :  { %v1345_v1 = vpop.permute.xlu1 %1344  ;;  %v1348_v2 = vmul.f32 %v2707_v60, %v1343_v62 }
 0x755   :  { %v1349_v3 = vmul.f32 %v2709_v63, %v1345_v1 }
 0x756   :  { %1352 = vrot.lane.b32.xlu0 %v1348_v2, %s2914_s3 }
 0x757   :  { %1354 = vrot.lane.b32.xlu1 %v1349_v3, %s2914_s3 }
 0x7c8   :  { %v1353_v8 = vpop.permute.xlu0 %1352 }
 0x7c9   :  { %v1355_v9 = vpop.permute.xlu1 %1354  ;;  %v3079_v10 = vadd.f32 %v1353_v8, %v1338_v6 }
 0x7ca   :  { %v3081_v11 = vadd.f32 %v1355_v9, %v1339_v7 }
 0x7cb   :  { %2710 = vtanh.f32 %v3079_v10  ;;  %v1474_v51 = vrot.slane %v3079_v10, 7 }
 0x7cc   :  { %2712 = vtanh.f32 %v3081_v11  ;;  %v1475_v52 = vrot.slane %v3081_v11, 7 }
 0x7d8   :  { %v2711_v12 = vpop.eup %2710 }
 0x7d9   :  { %v2713_v13 = vpop.eup %2712  ;;  %1364 = vrot.lane.b32.xlu0 %v2711_v12, %s2903_s24 }
 0x7da   :  { %1366 = vrot.lane.b32.xlu1 %v2713_v13, %s2903_s24 }
 0x84b   :  { %v1365_v14 = vpop.permute.xlu0 %1364 }
 0x84c   :  { %v1367_v15 = vpop.permute.xlu1 %1366  ;;  %v1370_v16 = vmul.f32 %v2707_v60, %v1365_v14 }
 0x84d   :  { %v1371_v18 = vmul.f32 %v2709_v63, %v1367_v15 }
 0x84e   :  { %v1374_v20 = vrot.slane %v1370_v16, 2  ;;  %v3091_v21 = vsel %vm2074_vm4, %v2073_v17, %v1370_v16 }
 0x84f   :  { %v1375_v22 = vrot.slane %v1371_v18, 1  ;;  %v3093_v23 = vsel %vm2074_vm4, %v2086_v19, %v1371_v18 }
 0x851   :  { %v1376_v24 = vsel %vm1097_vm1, %v1375_v22, %v1374_v20 }
 0x852   :  { %1377 = vrot.lane.b32.xlu0 %v1376_v24, %s2903_s24 }
 0x8c4   :  { %v1378_v26 = vpop.permute.xlu0 %1377 }
 0x8c5   :  { %2515 = vmatmul.mubr.msk.f32.vlgmr.msra.gmra.mxu1 %vm966_vm2, %v1378_v26 }
 0x8c6   :  { %2529 = vmatpush3.msra.mxu1 %v2974_v39  ;;  %2536 = vmatprep.mubr.msk.f32.mxu1 %vm2913_vm0, %v2912_v25 }
 0x8c7   :  { %2530 = vmatprep.subr.mxu1 %v2912_v25 }
 0x8c8   :  { %2531 = vmatpush3.msra.mxu1 %v2977_v40 }
 0x8c9   :  { %2532 = vmatprep.subr.mxu1 %v2912_v25 }
 0x8ca   :  { %2533 = vmatpush3.msra.mxu1 %v2980_v43 }
 0x8cb   :  { %2534 = vmatprep.subr.mxu1 %v2912_v25 }
 0x8cc   :  { %2535 = vmatpush3.msra.mxu1 %v2984_v44 }
 0x8cd   :  { %2550 = vmatprep.subr.mxu1 %v2912_v25 }
 0x985   :  { %v1447_v61 = vpop.f32.mrf.mxu1 }
 0x986   :  { %v1452_v0 = vrot.slane %v1447_v61, 5  ;;  %v1453_v27 = vrot.slane %v1447_v61, 6 }
 0x987   :  { %v2516_v28 = vpop.f32.mrf.mxu1 }
 0x988   :  { %v1456_v29 = vadd.f32 %v1452_v0, %v3015_v30  ;;  %v1457_v32 = vadd.f32 %v1453_v27, %v3017_v31 }
 0x98a   :  { %2714 = vtanh.f32 %v1456_v29  ;;  %v2300_v35 = vmul.f32 -1.442695, %v1456_v29  ;;  %v2301_v36 = vmul.f32 -1.442695, %v1457_v32 }
 0x98b   :  { %2716 = vtanh.f32 %v1457_v32 }
 0x98c   :  { %2718 = vpow2.f32 %v2300_v35 }
 0x98d   :  { %2720 = vpow2.f32 %v2301_v36 }
 0x997   :  { %v2715_v33 = vpop.eup %2714 }
 0x998   :  { %v2717_v34 = vpop.eup %2716  ;;  %1482 = vrot.lane.b32.xlu1 %v2715_v33, %s2903_s24 }
 0x999   :  { %1484 = vrot.lane.b32.xlu0 %v2717_v34, %s2903_s24  ;;  %v2719_v37 = vpop.eup %2718 }
 0x99a   :  { %v2721_v38 = vpop.eup %2720  ;;  %v1464_v41 = vadd.f32 1.0, %v2719_v37 }
 0x99b   :  { %v1465_v42 = vadd.f32 1.0, %v2721_v38 }
 0x99c   :  { %2722 = vrcp.f32 %v1464_v41 }
 0x99d   :  { %2724 = vrcp.f32 %v1465_v42 }
 0x9a9   :  { %v2723_v45 = vpop.eup %2722 }
 0x9aa   :  { %v2725_v47 = vpop.eup %2724  ;;  %v1478_v53 = vmul.f32 %v2723_v45, %v1474_v51 }
 0x9ab   :  { %v1479_v54 = vmul.f32 %v2725_v47, %v1475_v52 }
 0xa0a   :  { %v1483_v46 = vpop.permute.xlu1 %1482 }
 0xa0b   :  { %v1485_v48 = vpop.permute.xlu0 %1484  ;;  %v1488_v49 = vmul.f32 %v2723_v45, %v1483_v46 }
 0xa0c   :  { %v1489_v50 = vmul.f32 %v2725_v47, %v1485_v48 }
 0xa0d   :  { %1492 = vrot.lane.b32.xlu1 %v1488_v49, %s2914_s3 }
 0xa0e   :  { %1494 = vrot.lane.b32.xlu0 %v1489_v50, %s2914_s3 }
 0xa7f   :  { %v1493_v55 = vpop.permute.xlu1 %1492 }
 0xa80   :  { %v1495_v56 = vpop.permute.xlu0 %1494  ;;  %v1498_v57 = vadd.f32 %v1493_v55, %v1478_v53 }
 0xa81   :  { %v1499_v58 = vadd.f32 %v1495_v56, %v1479_v54 }
 0xa82   :  { %2726 = vtanh.f32 %v1498_v57  ;;  %v1614_v28 = vrot.slane %v1498_v57, 7 }
 0xa83   :  { %2728 = vtanh.f32 %v1499_v58  ;;  %v1615_v29 = vrot.slane %v1499_v58, 7 }
 0xa8f   :  { %v2727_v59 = vpop.eup %2726 }
 0xa90   :  { %v2729_v60 = vpop.eup %2728  ;;  %1504 = vrot.lane.b32.xlu1 %v2727_v59, %s2903_s24 }
 0xa91   :  { %1506 = vrot.lane.b32.xlu0 %v2729_v60, %s2903_s24 }
 0xb02   :  { %v1505_v62 = vpop.permute.xlu1 %1504 }
 0xb03   :  { %v1507_v63 = vpop.permute.xlu0 %1506  ;;  %v1510_v1 = vmul.f32 %v2723_v45, %v1505_v62 }
 0xb04   :  { %v1511_v2 = vmul.f32 %v2725_v47, %v1507_v63 }
 0xb05   :  { %v1514_v3 = vrot.slane %v1510_v1, 3  ;;  %v3119_v4 = vsel %vm2076_vm5, %v3091_v21, %v1510_v1 }
 0xb06   :  { %v1515_v5 = vrot.slane %v1511_v2, 2  ;;  %v3122_v6 = vsel %vm2076_vm5, %v3093_v23, %v1511_v2 }
 0xb08   :  { %v1516_v7 = vsel %vm1097_vm1, %v1515_v5, %v1514_v3 }
 0xb09   :  { %1517 = vrot.lane.b32.xlu1 %v1516_v7, %s2903_s24 }
 0xb7b   :  { %v1518_v8 = vpop.permute.xlu1 %1517 }
 0xb7c   :  { %2526 = vmatmul.mubr.msk.f32.vlgmr.msra.gmra.mxu0 %vm966_vm2, %v1518_v8 }
 0xb7d   :  { %2540 = vmatpush3.msra.mxu0 %v2974_v39  ;;  %2547 = vmatprep.mubr.msk.f32.mxu0 %vm2913_vm0, %v2912_v25 }
 0xb7e   :  { %2541 = vmatprep.subr.mxu0 %v2912_v25 }
 0xb7f   :  { %2542 = vmatpush3.msra.mxu0 %v2977_v40 }
 0xb80   :  { %2543 = vmatprep.subr.mxu0 %v2912_v25 }
 0xb81   :  { %2544 = vmatpush3.msra.mxu0 %v2980_v43 }
 0xb82   :  { %2545 = vmatprep.subr.mxu0 %v2912_v25 }
 0xb83   :  { %2546 = vmatpush3.msra.mxu0 %v2984_v44 }
 0xc3c   :  { %v1587_v9 = vpop.f32.mrf.mxu0 }
 0xc3d   :  { %v1592_v10 = vrot.slane %v1587_v9, 4  ;;  %v1593_v11 = vrot.slane %v1587_v9, 5 }
 0xc3e   :  { %v2527_v12 = vpop.f32.mrf.mxu0 }
 0xc3f   :  { %v1596_v13 = vadd.f32 %v1592_v10, %v3015_v30  ;;  %v1597_v14 = vadd.f32 %v1593_v11, %v3017_v31 }
 0xc41   :  { %2730 = vtanh.f32 %v1596_v13  ;;  %v2303_v17 = vmul.f32 -1.442695, %v1596_v13  ;;  %v2304_v18 = vmul.f32 -1.442695, %v1597_v14 }
 0xc42   :  { %2732 = vtanh.f32 %v1597_v14 }
 0xc43   :  { %2734 = vpow2.f32 %v2303_v17 }
 0xc44   :  { %2736 = vpow2.f32 %v2304_v18 }
 0xc4e   :  { %v2731_v15 = vpop.eup %2730 }
 0xc4f   :  { %v2733_v16 = vpop.eup %2732  ;;  %1622 = vrot.lane.b32.xlu0 %v2731_v15, %s2903_s24 }
 0xc50   :  { %1624 = vrot.lane.b32.xlu1 %v2733_v16, %s2903_s24  ;;  %v2735_v19 = vpop.eup %2734 }
 0xc51   :  { %v2737_v20 = vpop.eup %2736  ;;  %v1604_v21 = vadd.f32 1.0, %v2735_v19 }
 0xc52   :  { %v1605_v22 = vadd.f32 1.0, %v2737_v20 }
 0xc53   :  { %2738 = vrcp.f32 %v1604_v21 }
 0xc54   :  { %2740 = vrcp.f32 %v1605_v22 }
 0xc60   :  { %v2739_v23 = vpop.eup %2738 }
 0xc61   :  { %v2741_v26 = vpop.eup %2740  ;;  %v1618_v32 = vmul.f32 %v2739_v23, %v1614_v28 }
 0xc62   :  { %v1619_v33 = vmul.f32 %v2741_v26, %v1615_v29 }
 0xcc1   :  { %v1623_v24 = vpop.permute.xlu0 %1622 }
 0xcc2   :  { %v1625_v61 = vpop.permute.xlu1 %1624  ;;  %v1628_v0 = vmul.f32 %v2739_v23, %v1623_v24 }
 0xcc3   :  { %v1629_v27 = vmul.f32 %v2741_v26, %v1625_v61 }
 0xcc4   :  { %1632 = vrot.lane.b32.xlu0 %v1628_v0, %s2914_s3 }
 0xcc5   :  { %1634 = vrot.lane.b32.xlu1 %v1629_v27, %s2914_s3 }
 0xd36   :  { %v1633_v34 = vpop.permute.xlu0 %1632 }
 0xd37   :  { %v1635_v35 = vpop.permute.xlu1 %1634  ;;  %v1638_v36 = vadd.f32 %v1633_v34, %v1618_v32 }
 0xd38   :  { %v1639_v37 = vadd.f32 %v1635_v35, %v1619_v33 }
 0xd39   :  { %2742 = vtanh.f32 %v1638_v36  ;;  %v1754_v7 = vrot.slane %v1638_v36, 7 }
 0xd3a   :  { %2744 = vtanh.f32 %v1639_v37  ;;  %v1755_v8 = vrot.slane %v1639_v37, 7 }
 0xd46   :  { %v2743_v38 = vpop.eup %2742 }
 0xd47   :  { %v2745_v41 = vpop.eup %2744  ;;  %1644 = vrot.lane.b32.xlu0 %v2743_v38, %s2903_s24 }
 0xd48   :  { %1646 = vrot.lane.b32.xlu1 %v2745_v41, %s2903_s24 }
 0xdb9   :  { %v1645_v42 = vpop.permute.xlu0 %1644 }
 0xdba   :  { %v1647_v45 = vpop.permute.xlu1 %1646  ;;  %v1650_v46 = vmul.f32 %v2739_v23, %v1645_v42 }
 0xdbb   :  { %v1651_v47 = vmul.f32 %v2741_v26, %v1647_v45 }
 0xdbc   :  { %v1654_v48 = vrot.slane %v1650_v46, 4  ;;  %v3145_v49 = vsel %vm2078_vm6, %v3119_v4, %v1650_v46 }
 0xdbd   :  { %v1655_v50 = vrot.slane %v1651_v47, 3  ;;  %v3148_v51 = vsel %vm2078_vm6, %v3122_v6, %v1651_v47 }
 0xdbf   :  { %v1656_v52 = vsel %vm1097_vm1, %v1655_v50, %v1654_v48 }
 0xdc0   :  { %1657 = vrot.lane.b32.xlu0 %v1656_v52, %s2903_s24 }
 0xe32   :  { %v1658_v53 = vpop.permute.xlu0 %1657 }
 0xe33   :  { %2537 = vmatmul.mubr.msk.f32.vlgmr.msra.gmra.mxu1 %vm966_vm2, %v1658_v53 }
 0xe34   :  { %2551 = vmatpush3.msra.mxu1 %v2974_v39  ;;  %2558 = vmatprep.mubr.msk.f32.mxu1 %vm2913_vm0, %v2912_v25 }
 0xe35   :  { %2552 = vmatprep.subr.mxu1 %v2912_v25 }
 0xe36   :  { %2553 = vmatpush3.msra.mxu1 %v2977_v40 }
 0xe37   :  { %2554 = vmatprep.subr.mxu1 %v2912_v25 }
 0xe38   :  { %2555 = vmatpush3.msra.mxu1 %v2980_v43 }
 0xe39   :  { %2556 = vmatprep.subr.mxu1 %v2912_v25 }
 0xe3a   :  { %2557 = vmatpush3.msra.mxu1 %v2984_v44 }
 0xef3   :  { %v1727_v54 = vpop.f32.mrf.mxu1 }
 0xef4   :  { %v1732_v55 = vrot.slane %v1727_v54, 3  ;;  %v1733_v56 = vrot.slane %v1727_v54, 4 }
 0xef5   :  { %v2538_v57 = vpop.f32.mrf.mxu1 }
 0xef6   :  { %v1736_v39 = vadd.f32 %v1732_v55, %v3015_v30  ;;  %v1737_v58 = vadd.f32 %v1733_v56, %v3017_v31 }
 0xef8   :  { %2746 = vtanh.f32 %v1736_v39  ;;  %v2306_v43 = vmul.f32 -1.442695, %v1736_v39  ;;  %v2307_v25 = vmul.f32 -1.442695, %v1737_v58 }
 0xef9   :  { %2748 = vtanh.f32 %v1737_v58 }
 0xefa   :  { %2750 = vpow2.f32 %v2306_v43 }
 0xefb   :  { %2752 = vpow2.f32 %v2307_v25 }
 0xf05   :  { %v2747_v59 = vpop.eup %2746 }
 0xf06   :  { %v2749_v40 = vpop.eup %2748  ;;  %1762 = vrot.lane.b32.xlu1 %v2747_v59, %s2903_s24 }
 0xf07   :  { %1764 = vrot.lane.b32.xlu0 %v2749_v40, %s2903_s24  ;;  %v2751_v44 = vpop.eup %2750 }
 0xf08   :  { %v2753_v60 = vpop.eup %2752  ;;  %v1744_v62 = vadd.f32 1.0, %v2751_v44 }
 0xf09   :  { %v1745_v63 = vadd.f32 1.0, %v2753_v60 }
 0xf0a   :  { %2754 = vrcp.f32 %v1744_v62 }
 0xf0b   :  { %2756 = vrcp.f32 %v1745_v63 }
 0xf17   :  { %v2755_v1 = vpop.eup %2754 }
 0xf18   :  { %v2757_v3 = vpop.eup %2756  ;;  %v1758_v9 = vmul.f32 %v2755_v1, %v1754_v7 }
 0xf19   :  { %v1759_v10 = vmul.f32 %v2757_v3, %v1755_v8 }
 0xf78   :  { %v1763_v2 = vpop.permute.xlu1 %1762 }
 0xf79   :  { %v1765_v4 = vpop.permute.xlu0 %1764  ;;  %v1768_v5 = vmul.f32 %v2755_v1, %v1763_v2 }
 0xf7a   :  { %v1769_v6 = vmul.f32 %v2757_v3, %v1765_v4 }
 0xf7b   :  { %1772 = vrot.lane.b32.xlu1 %v1768_v5, %s2914_s3 }
 0xf7c   :  { %1774 = vrot.lane.b32.xlu0 %v1769_v6, %s2914_s3 }
 0xfed   :  { %v1773_v11 = vpop.permute.xlu1 %1772 }
 0xfee   :  { %v1775_v12 = vpop.permute.xlu0 %1774  ;;  %v1778_v13 = vadd.f32 %v1773_v11, %v1758_v9 }
 0xfef   :  { %v1779_v14 = vadd.f32 %v1775_v12, %v1759_v10 }
 0xff0   :  { %2758 = vtanh.f32 %v1778_v13  ;;  %v1894_v52 = vrot.slane %v1778_v13, 7 }
 0xff1   :  { %2760 = vtanh.f32 %v1779_v14  ;;  %v1895_v53 = vrot.slane %v1779_v14, 7 }
 0xffd   :  { %v2759_v15 = vpop.eup %2758 }
 0xffe   :  { %v2761_v16 = vpop.eup %2760  ;;  %1784 = vrot.lane.b32.xlu1 %v2759_v15, %s2903_s24 }
 0xfff   :  { %1786 = vrot.lane.b32.xlu0 %v2761_v16, %s2903_s24 }
0x1070   :  { %v1785_v17 = vpop.permute.xlu1 %1784 }
0x1071   :  { %v1787_v18 = vpop.permute.xlu0 %1786  ;;  %v1790_v19 = vmul.f32 %v2755_v1, %v1785_v17 }
0x1072   :  { %v1791_v20 = vmul.f32 %v2757_v3, %v1787_v18 }
0x1073   :  { %v1794_v21 = vrot.slane %v1790_v19, 5  ;;  %v2081_v22 = vsel %vm2080_vm7, %v3145_v49, %v1790_v19 }
0x1074   :  { %v1795_v23 = vrot.slane %v1791_v20, 4  ;;  %v2090_v24 = vsel %vm2080_vm7, %v3148_v51, %v1791_v20 }
0x1076   :  { %v1796_v26 = vsel %vm1097_vm1, %v1795_v23, %v1794_v21 }
0x1077   :  { %1797 = vrot.lane.b32.xlu1 %v1796_v26, %s2903_s24 }
0x10e9   :  { %v1798_v61 = vpop.permute.xlu1 %1797 }
0x10ea   :  { %2548 = vmatmul.mubr.msk.f32.vlgmr.msra.gmra.mxu0 %vm966_vm2, %v1798_v61 }
0x11aa   :  { %v1867_v0 = vpop.f32.mrf.mxu0 }
0x11ab   :  { %v1872_v27 = vrot.slane %v1867_v0, 2  ;;  %v1873_v28 = vrot.slane %v1867_v0, 3 }
0x11ac   :  { %v2549_v29 = vpop.f32.mrf.mxu0 }
0x11ad   :  { %v1876_v32 = vadd.f32 %v1872_v27, %v3015_v30  ;;  %v1877_v33 = vadd.f32 %v1873_v28, %v3017_v31 }
0x11af   :  { %2762 = vtanh.f32 %v1876_v32  ;;  %v2309_v36 = vmul.f32 -1.442695, %v1876_v32  ;;  %v2310_v37 = vmul.f32 -1.442695, %v1877_v33  ;;  %v2096_v32 = vld [vmem:[#allocation8 + $0x18] sm:$0xff] }
0x11b0   :  { %2764 = vtanh.f32 %v1877_v33  ;;  %v2095_v33 = vld [vmem:[#allocation8 + $0x10] sm:$0xff]  ;;  %2561 = vmatprep.subr.mxu0 %v2096_v32 }
0x11b1   :  { %2766 = vpow2.f32 %v2309_v36  ;;  %2562 = vmatpush3.msra.mxu0 %v2096_v32 }
0x11b2   :  { %2768 = vpow2.f32 %v2310_v37  ;;  %2563 = vmatprep.subr.mxu0 %v2095_v33 }
0x11b3   :  { %2564 = vmatpush3.msra.mxu0 %v2095_v33 }
0x11bc   :  { %v2763_v34 = vpop.eup %2762 }
0x11bd   :  { %v2765_v35 = vpop.eup %2764  ;;  %1902 = vrot.lane.b32.xlu0 %v2763_v34, %s2903_s24  ;;  %v2094_v34 = vld [vmem:[#allocation8 + $0x8] sm:$0xff] }
0x11be   :  { %1904 = vrot.lane.b32.xlu1 %v2765_v35, %s2903_s24  ;;  %v2767_v38 = vpop.eup %2766  ;;  %v2093_v35 = vld [vmem:[#allocation8] sm:$0xff]  ;;  %2565 = vmatprep.subr.mxu0 %v2094_v34 }
0x11bf   :  { %v2769_v41 = vpop.eup %2768  ;;  %v1884_v42 = vadd.f32 1.0, %v2767_v38  ;;  %2566 = vmatpush3.msra.mxu0 %v2094_v34 }
0x11c0   :  { %v1885_v45 = vadd.f32 1.0, %v2769_v41  ;;  %2567 = vmatprep.subr.mxu0 %v2093_v35 }
0x11c1   :  { %2770 = vrcp.f32 %v1884_v42  ;;  %2568 = vmatpush3.msra.mxu0 %v2093_v35 }
0x11c2   :  { %2772 = vrcp.f32 %v1885_v45 }
0x11ce   :  { %v2771_v46 = vpop.eup %2770 }
0x11cf   :  { %v2773_v48 = vpop.eup %2772  ;;  %v1898_v54 = vmul.f32 %v2771_v46, %v1894_v52 }
0x11d0   :  { %v1899_v55 = vmul.f32 %v2773_v48, %v1895_v53 }
0x122f   :  { %v1903_v47 = vpop.permute.xlu0 %1902 }
0x1230   :  { %v1905_v49 = vpop.permute.xlu1 %1904  ;;  %v1908_v50 = vmul.f32 %v2771_v46, %v1903_v47 }
0x1231   :  { %v1909_v51 = vmul.f32 %v2773_v48, %v1905_v49 }
0x1232   :  { %1912 = vrot.lane.b32.xlu0 %v1908_v50, %s2914_s3  ;;  %v2314_v50 = vld [vmem:[%s3218_s5] ss:$0 sm:$0xff] }
0x1233   :  { %1914 = vrot.lane.b32.xlu1 %v1909_v51, %s2914_s3 }
0x12a4   :  { %v1913_v56 = vpop.permute.xlu0 %1912 }
0x12a5   :  { %v1915_v57 = vpop.permute.xlu1 %1914  ;;  %v1918_v39 = vadd.f32 %v1913_v56, %v1898_v54 }
0x12a6   :  { %v1919_v58 = vadd.f32 %v1915_v57, %v1899_v55 }
0x12a7   :  { %2774 = vtanh.f32 %v1918_v39  ;;  %v2034_v23 = vrot.slane %v1918_v39, 7 }
0x12a8   :  { %2776 = vtanh.f32 %v1919_v58 }
0x12b4   :  { %v2775_v59 = vpop.eup %2774 }
0x12b5   :  { %v2777_v40 = vpop.eup %2776  ;;  %1924 = vrot.lane.b32.xlu0 %v2775_v59, %s2903_s24 }
0x12b6   :  { %1926 = vrot.lane.b32.xlu1 %v2777_v40, %s2903_s24 }
0x1327   :  { %v1925_v43 = vpop.permute.xlu0 %1924 }
0x1328   :  { %v1927_v25 = vpop.permute.xlu1 %1926  ;;  %v1930_v44 = vmul.f32 %v2771_v46, %v1925_v43 }
0x1329   :  { %v1931_v60 = vmul.f32 %v2773_v48, %v1927_v25 }
0x132a   :  { %v1934_v62 = vrot.slane %v1930_v44, 6  ;;  %v3183_v63 = vsel %vm2082_vm8, %v2081_v22, %v1930_v44 }
0x132b   :  { %v1935_v1 = vrot.slane %v1931_v60, 5  ;;  %v3185_v2 = vsel %vm2082_vm8, %v2090_v24, %v1931_v60  ;;  %v2035_v24 = vrot.slane %v1919_v58, 7 }
0x132d   :  { %v1936_v3 = vsel %vm1097_vm1, %v1935_v1, %v1934_v62 }
0x132e   :  { %1937 = vrot.lane.b32.xlu0 %v1936_v3, %s2903_s24 }
0x13a0   :  { %v1938_v4 = vpop.permute.xlu0 %1937 }
0x13a1   :  { %2559 = vmatmul.mubr.msk.f32.vlgmr.msra.gmra.mxu1 %vm966_vm2, %v1938_v4 }
0x1461   :  { %v2007_v5 = vpop.f32.mrf.mxu1 }
0x1462   :  { %v2012_v6 = vrot.slane %v2007_v5, 1  ;;  %v2013_v7 = vrot.slane %v2007_v5, 2 }
0x1463   :  { %v2560_v8 = vpop.f32.mrf.mxu1 }
0x1464   :  { %v2016_v9 = vadd.f32 %v2012_v6, %v3015_v30  ;;  %v2017_v10 = vadd.f32 %v2013_v7, %v3017_v31 }
0x1466   :  { %2778 = vtanh.f32 %v2016_v9  ;;  %v2312_v13 = vmul.f32 -1.442695, %v2016_v9  ;;  %v2313_v14 = vmul.f32 -1.442695, %v2017_v10 }
0x1467   :  { %2780 = vtanh.f32 %v2017_v10 }
0x1468   :  { %2782 = vpow2.f32 %v2312_v13 }
0x1469   :  { %2784 = vpow2.f32 %v2313_v14 }
0x1473   :  { %v2779_v11 = vpop.eup %2778 }
0x1474   :  { %v2781_v12 = vpop.eup %2780  ;;  %2042 = vrot.lane.b32.xlu1 %v2779_v11, %s2903_s24 }
0x1475   :  { %2044 = vrot.lane.b32.xlu0 %v2781_v12, %s2903_s24  ;;  %v2783_v15 = vpop.eup %2782 }
0x1476   :  { %v2785_v16 = vpop.eup %2784  ;;  %v2024_v17 = vadd.f32 1.0, %v2783_v15 }
0x1477   :  { %v2025_v18 = vadd.f32 1.0, %v2785_v16 }
0x1478   :  { %2786 = vrcp.f32 %v2024_v17 }
0x1479   :  { %2788 = vrcp.f32 %v2025_v18 }
0x1485   :  { %v2787_v30 = vpop.eup %2786 }
0x1486   :  { %v2789_v19 = vpop.eup %2788  ;;  %v2038_v26 = vmul.f32 %v2787_v30, %v2034_v23 }
0x1487   :  { %v2039_v61 = vmul.f32 %v2789_v19, %v2035_v24 }
0x14e6   :  { %v2043_v31 = vpop.permute.xlu1 %2042 }
0x14e7   :  { %v2045_v20 = vpop.permute.xlu0 %2044  ;;  %v2048_v21 = vmul.f32 %v2787_v30, %v2043_v31 }
0x14e8   :  { %v2049_v22 = vmul.f32 %v2789_v19, %v2045_v20 }
0x14e9   :  { %2052 = vrot.lane.b32.xlu1 %v2048_v21, %s2914_s3 }
0x14ea   :  { %2054 = vrot.lane.b32.xlu0 %v2049_v22, %s2914_s3 }
0x155b   :  { %v2053_v0 = vpop.permute.xlu1 %2052 }
0x155c   :  { %v2055_v27 = vpop.permute.xlu0 %2054  ;;  %v2058_v28 = vadd.f32 %v2053_v0, %v2038_v26 }
0x155d   :  { %v2059_v29 = vadd.f32 %v2055_v27, %v2039_v61 }
0x155e   :  { %2790 = vtanh.f32 %v2058_v28 }
0x155f   :  { %2792 = vtanh.f32 %v2059_v29 }
0x156b   :  { %v2791_v36 = vpop.eup %2790 }
0x156c   :  { %v2793_v37 = vpop.eup %2792  ;;  %2064 = vrot.lane.b32.xlu1 %v2791_v36, %s2903_s24 }
0x156d   :  { %2066 = vrot.lane.b32.xlu0 %v2793_v37, %s2903_s24 }
0x15de   :  { %v2065_v38 = vpop.permute.xlu1 %2064 }
0x15df   :  { %v2067_v41 = vpop.permute.xlu0 %2066  ;;  %v2070_v42 = vmul.f32 %v2787_v30, %v2065_v38 }
0x15e0   :  { %v2071_v45 = vmul.f32 %v2789_v19, %v2067_v41 }
0x15e1   :  { %v2085_v46 = vsel %vm2084_vm9, %v3183_v63, %v2070_v42 }
0x15e2   :  { %v2092_v47 = vsel %vm2084_vm9, %v3185_v2, %v2071_v45  ;;  %2106 = vrot.lane.b32.xlu1 %v2085_v46, %s2903_s24 }
0x15e3   :  { %2108 = vrot.lane.b32.xlu0 %v2092_v47, %s2903_s24  ;;  %s2874_s24 = scalar_lea.vmem %s2197_s25, 256 }
0x15e4   :  { %p2875_p6 = scmp.ne.s32.totalorder %s2197_s25, %s2874_s24  ;;  %p2880_p8 = scmp.lt.s32.totalorder %s2874_s24, %s2874_s24 }
0x15e6   :  { %p2881_p9 = por %p2880_p8, %p2879_p7 }
0x15e8   :  { %p2882_p10 = pnand %p2881_p9, %p2875_p6 }
0x1654   :  { %v2107_v48 = vpop.permute.xlu1 %2106 }
0x1655   :  { %v2109_v49 = vpop.permute.xlu0 %2108  ;;  %2569 = vmatprep.mubr.msk.f32.mxu0 %vm966_vm2, %v2107_v48 }
0x1656   :  { %2570 = vmatmul.mubr.msk.f32.vlgmr.msra.gmra.mxu0 %vm966_vm2, %v2109_v49 }
0x1716   :  { %v2571_v51 = vpop.f32.mrf.mxu0 }
0x1717   :  { %v2186_v52 = vadd.f32 %v2571_v51, %v2314_v50 }
0x1718   :  { %v2180_v53 = vpop.f32.mrf.mxu0 }
0x1719   :  { %2190 = vst [vmem:[#allocation10 + $0x8] sm:$0xff] %v2186_v52  ;;  %v2181_v54 = vadd.f32 %v2314_v50, %v2180_v53 }
0x171b   :  { %2189 = vst [vmem:[#allocation10] sm:$0xff] %v2181_v54 }
0x171c   :  { %2885 = shalt.err (!%p2882_p10)
}
0x171d   :  { %2202 = dma.vmem_to_hbm [thread:$0]  %s2197_s25, 256, %s3219_s6, [#allocation4], %s2909_s13, %s2909_s13, %s2910_s14  }
0x171e   :  { %2900 = dma.done.wait [#allocation4], 256  }
0x171f   :  { %2901 = vsyncadd [#allocation4], 4294967040 }
0x1720   :  { %2206 = vsyncpa [#allocation3], 1 }
0x1721   :  { %2207 = vsyncpa [#allocation6], 1 }
0x1722   :  { %2208 = vsyncpa [#allocation9], 1 }
0x1723   :  { %2209 = vsyncpa [#allocation4], 1 }

</bundles_post_ra>
